<compile_context>
chip_gen: v6e
topology: v6e:2x2x1
jax: 0.10.0
libtpu: 0.0.40
codegen_flags: <defaults>
</compile_context>

<pallas_src>
import jax
import jax.numpy as jnp
from jax.experimental import pallas as pl
from jax.experimental.pallas import tpu as pltpu

LN_EPS = 1e-5


def _round_up(n, m):
    return ((n + m - 1) // m) * m


def _cdiv(a, b):
    return -(-a // b)


def _layernorm(h, gamma, beta):
    mean = jnp.mean(h, axis=-1, keepdims=True)
    centered = h - mean
    var = jnp.mean(centered * centered, axis=-1, keepdims=True)
    inv = jax.lax.rsqrt(var + LN_EPS)
    return centered * inv * gamma + beta


def multimodal_kernel(text_ref, audio_ref, video_ref, mask_ref,
                      w1t_ref, w1a_ref, w1v_ref, vp1_ref,
                      w2s_ref, vp2_ref, mw1s_ref, mw2p_ref, mvec_ref,
                      out_ref):
    # text_ref:[TB,100] audio_ref:[TB,73] video_ref:[TB,100] mask_ref:[TB,1]
    mask = mask_ref[...].astype(jnp.bfloat16)            # {0,1} -> exact in bf16
    vp1 = vp1_ref[...]                                    # [3, 3, 128] f32
    vp2 = vp2_ref[...]                                    # [3, 3, 64]  f32
    w2s = w2s_ref[...]                                    # [3, 128, 64] bf16
    mw1 = mw1s_ref[...]                                   # [3, 64, 192] bf16
    mvec = mvec_ref[...]                                  # [2, 192] f32

    def branch(s, x_ref, w1_ref):
        # Linear(d,128) -> LN(128) -> ReLU -> Linear(128,64) -> LN(64) -> ReLU
        x = x_ref[...].astype(jnp.bfloat16) * mask        # mask is {0,1}: exact
        h = jnp.dot(x, w1_ref[...], preferred_element_type=jnp.float32)
        h = _layernorm(h + vp1[s, 0:1, :], vp1[s, 1:2, :], vp1[s, 2:3, :])
        h = jnp.maximum(h, 0.0)
        h = jnp.dot(h.astype(jnp.bfloat16), w2s[s],
                    preferred_element_type=jnp.float32)
        h = _layernorm(h + vp2[s, 0:1, :], vp2[s, 1:2, :], vp2[s, 2:3, :])
        return jnp.maximum(h, 0.0).astype(jnp.bfloat16)   # [TB, 64]

    tf = branch(0, text_ref, w1t_ref)
    af = branch(1, audio_ref, w1a_ref)
    vf = branch(2, video_ref, w1v_ref)

    # ---- Merge layer 1: concat-free (three 64-row weight slices, f32 acc) --
    m = (jnp.dot(tf, mw1[0], preferred_element_type=jnp.float32)
         + jnp.dot(af, mw1[1], preferred_element_type=jnp.float32)
         + jnp.dot(vf, mw1[2], preferred_element_type=jnp.float32)
         + mvec[0:1, :])                                   # [TB, 192]
    m = jnp.maximum(m, 0.0)
    # Dropout(0.5): inference/eval mode -> identity.

    # ---- Merge layer 2: lane-dense output (2 -> 128 zero-padded out lanes) -
    out = jnp.dot(m.astype(jnp.bfloat16), mw2p_ref[...],
                  preferred_element_type=jnp.float32)      # [TB, 128]
    out = out + mvec[1:2, 0:128]
    out_ref[...] = out.astype(out_ref.dtype)


def multimodal_forward(text, audio, video, mask, packed, block_b=1024):
    """packed = (w1t, w1a, w1v, vp1, w2s, vp2, mw1s, mw2p, mvec)."""
    w1t, w1a, w1v, vp1, w2s, vp2, mw1s, mw2p, mvec = packed
    B = text.shape[0]

    # Balanced batch tiles; >=2 blocks whenever possible so the "parallel"
    # batch axis can shard over v7x's two TensorCores (harmless on v5e/v6e).
    n_blocks = max(1, _cdiv(B, block_b))
    if B >= 16:
        n_blocks = max(n_blocks, 2)
    TB = _round_up(_cdiv(B, n_blocks), 8)
    B_pad = _round_up(B, TB)
    n_blocks = B_pad // TB

    def pad_b(x):
        x = x.astype(jnp.float32)
        if B_pad == B:
            return x
        return jnp.pad(x, ((0, B_pad - B), (0, 0)))

    text_p = pad_b(text)
    audio_p = pad_b(audio)
    video_p = pad_b(video)
    mask2d = pad_b(mask.reshape(B, 1))

    def const_spec(x):
        n = x.ndim
        return pl.BlockSpec(x.shape, lambda i, _n=n: (0,) * _n)

    # Advisory cost estimate (helps XLA schedule around this small kernel).
    flops = 2 * B_pad * (100 * 128 + 73 * 128 + 100 * 128   # branch layer 1
                         + 3 * 128 * 64                      # branch layer 2
                         + 3 * 64 * 192                      # merge layer 1
                         + 192 * 128)                        # merge layer 2
    weight_bytes = sum(int(x.size) * x.dtype.itemsize for x in packed)
    bytes_accessed = (B_pad * (100 + 73 + 100 + 1) * 4       # f32 inputs
                      + weight_bytes
                      + B_pad * 128 * 2)                      # bf16 output
    cost = pl.CostEstimate(flops=int(flops),
                           transcendentals=int(6 * B_pad),
                           bytes_accessed=int(bytes_accessed))

    out_pad = pl.pallas_call(
        multimodal_kernel,
        grid=(n_blocks,),
        out_shape=jax.ShapeDtypeStruct((B_pad, 128), jnp.bfloat16),
        in_specs=[
            pl.BlockSpec((TB, 100), lambda i: (i, 0)),   # text  (batch-tiled)
            pl.BlockSpec((TB, 73), lambda i: (i, 0)),    # audio
            pl.BlockSpec((TB, 100), lambda i: (i, 0)),   # video
            pl.BlockSpec((TB, 1), lambda i: (i, 0)),     # mask
            const_spec(w1t), const_spec(w1a), const_spec(w1v), const_spec(vp1),
            const_spec(w2s), const_spec(vp2), const_spec(mw1s),
            const_spec(mw2p), const_spec(mvec),          # weights stay VMEM-resident
        ],
        out_specs=pl.BlockSpec((TB, 128), lambda i: (i, 0)),
        compiler_params=pltpu.CompilerParams(
            dimension_semantics=("parallel",)),           # v7x: shard over 2 TCs
        cost_estimate=cost,
    )(text_p, audio_p, video_p, mask2d,
      w1t, w1a, w1v, vp1, w2s, vp2, mw1s, mw2p, mvec)

    return out_pad[:B, :2].astype(jnp.float32)


def init_params(key):
    """PyTorch-equivalent init. Linear weights stored as [in, out] f32."""
    def linear(key, fan_in, fan_out):
        k1, k2 = jax.random.split(key)
        bound = 1.0 / jnp.sqrt(fan_in)
        w = jax.random.uniform(k1, (fan_in, fan_out), jnp.float32, -bound, bound)
        b = jax.random.uniform(k2, (fan_out,), jnp.float32, -bound, bound)
        return w, b

    keys = jax.random.split(key, 8)
    branch_in = [100, 73, 100]     # text, audio, video
    branches = []
    for i, d in enumerate(branch_in):
        w1, b1 = linear(keys[2 * i], d, 128)
        g1, be1 = jnp.ones((128,), jnp.float32), jnp.zeros((128,), jnp.float32)
        w2, b2 = linear(keys[2 * i + 1], 128, 64)
        g2, be2 = jnp.ones((64,), jnp.float32), jnp.zeros((64,), jnp.float32)
        branches.append((w1, b1, g1, be1, w2, b2, g2, be2))
    mw1, mb1 = linear(keys[6], 192, 192)
    mw2, mb2 = linear(keys[7], 192, 2)
    return branches, (mw1, mb1, mw2, mb2)


def pack_params(branches, merge):
    """Cast / stack / pad parameters into the kernel-friendly layout."""
    # Layer-1 weights kept at native K (100/73/100), bf16 for the MXU.
    w1t = branches[0][0].astype(jnp.bfloat16)                 # [100, 128]
    w1a = branches[1][0].astype(jnp.bfloat16)                 # [73, 128]
    w1v = branches[2][0].astype(jnp.bfloat16)                 # [100, 128]
    # Layer-1 bias/gamma/beta packed -> [3 branches, 3 kinds, 128] f32.
    vp1 = jnp.stack([jnp.stack([b[1], b[2], b[3]], 0) for b in branches],
                    0).astype(jnp.float32)
    # Layer-2 weights stacked -> [3,128,64] bf16; vectors -> [3,3,64] f32.
    w2s = jnp.stack([b[4] for b in branches], 0).astype(jnp.bfloat16)
    vp2 = jnp.stack([jnp.stack([b[5], b[6], b[7]], 0) for b in branches],
                    0).astype(jnp.float32)

    mw1, mb1, mw2, mb2 = merge
    # Merge layer-1 weight split into three 64-row slices -> [3,64,192] bf16.
    mw1s = jnp.stack([mw1[0:64], mw1[64:128], mw1[128:192]],
                     0).astype(jnp.bfloat16)
    # Merge layer-2 weight zero-padded to 128 output lanes -> [192,128] bf16.
    mw2p = jnp.pad(mw2, ((0, 0), (0, 128 - mw2.shape[1]))).astype(jnp.bfloat16)
    # Merge biases packed: row 0 = mb1 (192), row 1 = mb2 zero-padded to 192.
    mvec = jnp.stack([mb1, jnp.pad(mb2, (0, 192 - mb2.shape[0]))],
                     0).astype(jnp.float32)
    return (w1t, w1a, w1v, vp1, w2s, vp2, mw1s, mw2p, mvec)


if __name__ == "__main__":
    key = jax.random.PRNGKey(0)
    k_text, k_audio, k_video, k_mask, k_params = jax.random.split(key, 5)

    B = 8
    text = jax.random.normal(k_text, (B, 100), jnp.float32)
    audio = jax.random.normal(k_audio, (B, 73), jnp.float32)
    video = jax.random.normal(k_video, (B, 100), jnp.float32)
    mask = (jax.random.uniform(k_mask, (B,)) > 0.3).astype(jnp.float32)

    branches, merge = init_params(k_params)
    packed = pack_params(branches, merge)

    out = multimodal_forward(text, audio, video, mask, packed)
    jax.block_until_ready(out)
    assert out.shape == (B, 2), out.shape
    print("KERNEL_OK")
</pallas_src>

<mosaic_0001>
module attributes {stable_mosaic.version = 11 : i64} {
  func.func @multimodal_kernel(%arg0: i32, %arg1: memref<8x100xf32, #tpu.memory_space<vmem>>, %arg2: memref<8x73xf32, #tpu.memory_space<vmem>>, %arg3: memref<8x100xf32, #tpu.memory_space<vmem>>, %arg4: memref<8x1xf32, #tpu.memory_space<vmem>>, %arg5: memref<100x128xbf16, #tpu.memory_space<vmem>>, %arg6: memref<73x128xbf16, #tpu.memory_space<vmem>>, %arg7: memref<100x128xbf16, #tpu.memory_space<vmem>>, %arg8: memref<3x3x128xf32, #tpu.memory_space<vmem>>, %arg9: memref<3x128x64xbf16, #tpu.memory_space<vmem>>, %arg10: memref<3x3x64xf32, #tpu.memory_space<vmem>>, %arg11: memref<3x64x192xbf16, #tpu.memory_space<vmem>>, %arg12: memref<192x128xbf16, #tpu.memory_space<vmem>>, %arg13: memref<2x192xf32, #tpu.memory_space<vmem>>, %arg14: memref<8x128xbf16, #tpu.memory_space<vmem>>) attributes {dimension_semantics = [#tpu.dimension_semantics<parallel>], iteration_bounds = array<i64: 1>, scalar_prefetch = 0 : i64, scratch_operands = 0 : i64, tpu.core_type = #tpu.core_type<tc>, window_params = [{transform_indices = @transform_0, window_bounds = array<i64: 8, 100>}, {transform_indices = @transform_1, window_bounds = array<i64: 8, 73>}, {transform_indices = @transform_2, window_bounds = array<i64: 8, 100>}, {transform_indices = @transform_3, window_bounds = array<i64: 8, 1>}, {pipeline_mode = #tpu.pipeline_mode<synchronous>, transform_indices = @transform_4, window_bounds = array<i64: 100, 128>}, {pipeline_mode = #tpu.pipeline_mode<synchronous>, transform_indices = @transform_5, window_bounds = array<i64: 73, 128>}, {pipeline_mode = #tpu.pipeline_mode<synchronous>, transform_indices = @transform_6, window_bounds = array<i64: 100, 128>}, {pipeline_mode = #tpu.pipeline_mode<synchronous>, transform_indices = @transform_7, window_bounds = array<i64: 3, 3, 128>}, {pipeline_mode = #tpu.pipeline_mode<synchronous>, transform_indices = @transform_8, window_bounds = array<i64: 3, 128, 64>}, {pipeline_mode = #tpu.pipeline_mode<synchronous>, transform_indices = @transform_9, window_bounds = array<i64: 3, 3, 64>}, {pipeline_mode = #tpu.pipeline_mode<synchronous>, transform_indices = @transform_10, window_bounds = array<i64: 3, 64, 192>}, {pipeline_mode = #tpu.pipeline_mode<synchronous>, transform_indices = @transform_11, window_bounds = array<i64: 192, 128>}, {pipeline_mode = #tpu.pipeline_mode<synchronous>, transform_indices = @transform_12, window_bounds = array<i64: 2, 192>}, {transform_indices = @transform_13, window_bounds = array<i64: 8, 128>}]} {
    %c0 = arith.constant 0 : index
    %c0_0 = arith.constant 0 : index
    %0 = vector.load %arg4[%c0, %c0_0] : memref<8x1xf32, #tpu.memory_space<vmem>>, vector<8x1xf32>
    %1 = arith.truncf %0 : vector<8x1xf32> to vector<8x1xbf16>
    %c0_1 = arith.constant 0 : index
    %c0_2 = arith.constant 0 : index
    %c0_3 = arith.constant 0 : index
    %2 = vector.load %arg8[%c0_1, %c0_2, %c0_3] : memref<3x3x128xf32, #tpu.memory_space<vmem>>, vector<3x3x128xf32>
    %c0_4 = arith.constant 0 : index
    %c0_5 = arith.constant 0 : index
    %c0_6 = arith.constant 0 : index
    %3 = vector.load %arg10[%c0_4, %c0_5, %c0_6] : memref<3x3x64xf32, #tpu.memory_space<vmem>>, vector<3x3x64xf32>
    %c0_7 = arith.constant 0 : index
    %c0_8 = arith.constant 0 : index
    %c0_9 = arith.constant 0 : index
    %4 = vector.load %arg9[%c0_7, %c0_8, %c0_9] : memref<3x128x64xbf16, #tpu.memory_space<vmem>>, vector<3x128x64xbf16>
    %c0_10 = arith.constant 0 : index
    %c0_11 = arith.constant 0 : index
    %c0_12 = arith.constant 0 : index
    %5 = vector.load %arg11[%c0_10, %c0_11, %c0_12] : memref<3x64x192xbf16, #tpu.memory_space<vmem>>, vector<3x64x192xbf16>
    %c0_13 = arith.constant 0 : index
    %c0_14 = arith.constant 0 : index
    %6 = vector.load %arg13[%c0_13, %c0_14] : memref<2x192xf32, #tpu.memory_space<vmem>>, vector<2x192xf32>
    %c0_15 = arith.constant 0 : index
    %c0_16 = arith.constant 0 : index
    %7 = vector.load %arg1[%c0_15, %c0_16] : memref<8x100xf32, #tpu.memory_space<vmem>>, vector<8x100xf32>
    %8 = arith.truncf %7 : vector<8x100xf32> to vector<8x100xbf16>
    %9 = vector.broadcast %1 : vector<8x1xbf16> to vector<8x100xbf16>
    %10 = arith.mulf %8, %9 : vector<8x100xbf16>
    %c0_17 = arith.constant 0 : index
    %c0_18 = arith.constant 0 : index
    %11 = vector.load %arg5[%c0_17, %c0_18] : memref<100x128xbf16, #tpu.memory_space<vmem>>, vector<100x128xbf16>
    %cst = arith.constant dense<0.000000e+00> : vector<8x128xf32>
    %12 = tpu.matmul %10, %11, %cst {dimension_numbers = #tpu.dot_dimension_numbers<[1], [0], [0], [1], [0, 0, 1, 1], [], []>} : vector<8x100xbf16>, vector<100x128xbf16>, vector<8x128xf32> -> vector<8x128xf32>
    %13 = vector.extract_strided_slice %2 {offsets = [0, 0, 0], sizes = [1, 1, 128], strides = [1, 1, 1]} : vector<3x3x128xf32> to vector<1x1x128xf32>
    %14 = vector.shape_cast %13 : vector<1x1x128xf32> to vector<1x128xf32>
    %15 = vector.broadcast %14 : vector<1x128xf32> to vector<8x128xf32>
    %16 = arith.addf %12, %15 : vector<8x128xf32>
    %17 = vector.extract_strided_slice %2 {offsets = [0, 1, 0], sizes = [1, 1, 128], strides = [1, 1, 1]} : vector<3x3x128xf32> to vector<1x1x128xf32>
    %18 = vector.shape_cast %17 : vector<1x1x128xf32> to vector<1x128xf32>
    %19 = vector.extract_strided_slice %2 {offsets = [0, 2, 0], sizes = [1, 1, 128], strides = [1, 1, 1]} : vector<3x3x128xf32> to vector<1x1x128xf32>
    %20 = vector.shape_cast %19 : vector<1x1x128xf32> to vector<1x128xf32>
    %cst_19 = arith.constant dense<0.000000e+00> : vector<8xf32>
    %21 = vector.multi_reduction <add>, %16, %cst_19 [1] : vector<8x128xf32> to vector<8xf32>
    %22 = vector.shape_cast %21 : vector<8xf32> to vector<8x1xf32>
    %cst_20 = arith.constant 1.280000e+02 : f32
    %23 = vector.broadcast %cst_20 : f32 to vector<8x1xf32>
    %24 = arith.divf %22, %23 : vector<8x1xf32>
    %25 = vector.broadcast %24 : vector<8x1xf32> to vector<8x128xf32>
    %26 = arith.subf %16, %25 : vector<8x128xf32>
    %27 = arith.mulf %26, %26 : vector<8x128xf32>
    %cst_21 = arith.constant dense<0.000000e+00> : vector<8xf32>
    %28 = vector.multi_reduction <add>, %27, %cst_21 [1] : vector<8x128xf32> to vector<8xf32>
    %29 = vector.shape_cast %28 : vector<8xf32> to vector<8x1xf32>
    %cst_22 = arith.constant 1.280000e+02 : f32
    %30 = vector.broadcast %cst_22 : f32 to vector<8x1xf32>
    %31 = arith.divf %29, %30 : vector<8x1xf32>
    %cst_23 = arith.constant 9.99999974E-6 : f32
    %32 = vector.broadcast %cst_23 : f32 to vector<8x1xf32>
    %33 = arith.addf %31, %32 : vector<8x1xf32>
    %34 = math.rsqrt %33 : vector<8x1xf32>
    %35 = vector.broadcast %34 : vector<8x1xf32> to vector<8x128xf32>
    %36 = arith.mulf %26, %35 : vector<8x128xf32>
    %37 = vector.broadcast %18 : vector<1x128xf32> to vector<8x128xf32>
    %38 = arith.mulf %36, %37 : vector<8x128xf32>
    %39 = vector.broadcast %20 : vector<1x128xf32> to vector<8x128xf32>
    %40 = arith.addf %38, %39 : vector<8x128xf32>
    %cst_24 = arith.constant 0.000000e+00 : f32
    %41 = vector.broadcast %cst_24 : f32 to vector<8x128xf32>
    %42 = arith.maximumf %40, %41 : vector<8x128xf32>
    %43 = arith.truncf %42 : vector<8x128xf32> to vector<8x128xbf16>
    %44 = vector.extract_strided_slice %4 {offsets = [0, 0, 0], sizes = [1, 128, 64], strides = [1, 1, 1]} : vector<3x128x64xbf16> to vector<1x128x64xbf16>
    %45 = vector.shape_cast %44 : vector<1x128x64xbf16> to vector<128x64xbf16>
    %cst_25 = arith.constant dense<0.000000e+00> : vector<8x64xf32>
    %46 = tpu.matmul %43, %45, %cst_25 {dimension_numbers = #tpu.dot_dimension_numbers<[1], [0], [0], [1], [0, 0, 1, 1], [], []>} : vector<8x128xbf16>, vector<128x64xbf16>, vector<8x64xf32> -> vector<8x64xf32>
    %47 = vector.extract_strided_slice %3 {offsets = [0, 0, 0], sizes = [1, 1, 64], strides = [1, 1, 1]} : vector<3x3x64xf32> to vector<1x1x64xf32>
    %48 = vector.shape_cast %47 : vector<1x1x64xf32> to vector<1x64xf32>
    %49 = vector.broadcast %48 : vector<1x64xf32> to vector<8x64xf32>
    %50 = arith.addf %46, %49 : vector<8x64xf32>
    %51 = vector.extract_strided_slice %3 {offsets = [0, 1, 0], sizes = [1, 1, 64], strides = [1, 1, 1]} : vector<3x3x64xf32> to vector<1x1x64xf32>
    %52 = vector.shape_cast %51 : vector<1x1x64xf32> to vector<1x64xf32>
    %53 = vector.extract_strided_slice %3 {offsets = [0, 2, 0], sizes = [1, 1, 64], strides = [1, 1, 1]} : vector<3x3x64xf32> to vector<1x1x64xf32>
    %54 = vector.shape_cast %53 : vector<1x1x64xf32> to vector<1x64xf32>
    %cst_26 = arith.constant dense<0.000000e+00> : vector<8xf32>
    %55 = vector.multi_reduction <add>, %50, %cst_26 [1] : vector<8x64xf32> to vector<8xf32>
    %56 = vector.shape_cast %55 : vector<8xf32> to vector<8x1xf32>
    %cst_27 = arith.constant 6.400000e+01 : f32
    %57 = vector.broadcast %cst_27 : f32 to vector<8x1xf32>
    %58 = arith.divf %56, %57 : vector<8x1xf32>
    %59 = vector.broadcast %58 : vector<8x1xf32> to vector<8x64xf32>
    %60 = arith.subf %50, %59 : vector<8x64xf32>
    %61 = arith.mulf %60, %60 : vector<8x64xf32>
    %cst_28 = arith.constant dense<0.000000e+00> : vector<8xf32>
    %62 = vector.multi_reduction <add>, %61, %cst_28 [1] : vector<8x64xf32> to vector<8xf32>
    %63 = vector.shape_cast %62 : vector<8xf32> to vector<8x1xf32>
    %cst_29 = arith.constant 6.400000e+01 : f32
    %64 = vector.broadcast %cst_29 : f32 to vector<8x1xf32>
    %65 = arith.divf %63, %64 : vector<8x1xf32>
    %cst_30 = arith.constant 9.99999974E-6 : f32
    %66 = vector.broadcast %cst_30 : f32 to vector<8x1xf32>
    %67 = arith.addf %65, %66 : vector<8x1xf32>
    %68 = math.rsqrt %67 : vector<8x1xf32>
    %69 = vector.broadcast %68 : vector<8x1xf32> to vector<8x64xf32>
    %70 = arith.mulf %60, %69 : vector<8x64xf32>
    %71 = vector.broadcast %52 : vector<1x64xf32> to vector<8x64xf32>
    %72 = arith.mulf %70, %71 : vector<8x64xf32>
    %73 = vector.broadcast %54 : vector<1x64xf32> to vector<8x64xf32>
    %74 = arith.addf %72, %73 : vector<8x64xf32>
    %cst_31 = arith.constant 0.000000e+00 : f32
    %75 = vector.broadcast %cst_31 : f32 to vector<8x64xf32>
    %76 = arith.maximumf %74, %75 : vector<8x64xf32>
    %77 = arith.truncf %76 : vector<8x64xf32> to vector<8x64xbf16>
    %c0_32 = arith.constant 0 : index
    %c0_33 = arith.constant 0 : index
    %78 = vector.load %arg2[%c0_32, %c0_33] : memref<8x73xf32, #tpu.memory_space<vmem>>, vector<8x73xf32>
    %79 = arith.truncf %78 : vector<8x73xf32> to vector<8x73xbf16>
    %80 = vector.broadcast %1 : vector<8x1xbf16> to vector<8x73xbf16>
    %81 = arith.mulf %79, %80 : vector<8x73xbf16>
    %c0_34 = arith.constant 0 : index
    %c0_35 = arith.constant 0 : index
    %82 = vector.load %arg6[%c0_34, %c0_35] : memref<73x128xbf16, #tpu.memory_space<vmem>>, vector<73x128xbf16>
    %cst_36 = arith.constant dense<0.000000e+00> : vector<8x128xf32>
    %83 = tpu.matmul %81, %82, %cst_36 {dimension_numbers = #tpu.dot_dimension_numbers<[1], [0], [0], [1], [0, 0, 1, 1], [], []>} : vector<8x73xbf16>, vector<73x128xbf16>, vector<8x128xf32> -> vector<8x128xf32>
    %84 = vector.extract_strided_slice %2 {offsets = [1, 0, 0], sizes = [1, 1, 128], strides = [1, 1, 1]} : vector<3x3x128xf32> to vector<1x1x128xf32>
    %85 = vector.shape_cast %84 : vector<1x1x128xf32> to vector<1x128xf32>
    %86 = vector.broadcast %85 : vector<1x128xf32> to vector<8x128xf32>
    %87 = arith.addf %83, %86 : vector<8x128xf32>
    %88 = vector.extract_strided_slice %2 {offsets = [1, 1, 0], sizes = [1, 1, 128], strides = [1, 1, 1]} : vector<3x3x128xf32> to vector<1x1x128xf32>
    %89 = vector.shape_cast %88 : vector<1x1x128xf32> to vector<1x128xf32>
    %90 = vector.extract_strided_slice %2 {offsets = [1, 2, 0], sizes = [1, 1, 128], strides = [1, 1, 1]} : vector<3x3x128xf32> to vector<1x1x128xf32>
    %91 = vector.shape_cast %90 : vector<1x1x128xf32> to vector<1x128xf32>
    %cst_37 = arith.constant dense<0.000000e+00> : vector<8xf32>
    %92 = vector.multi_reduction <add>, %87, %cst_37 [1] : vector<8x128xf32> to vector<8xf32>
    %93 = vector.shape_cast %92 : vector<8xf32> to vector<8x1xf32>
    %cst_38 = arith.constant 1.280000e+02 : f32
    %94 = vector.broadcast %cst_38 : f32 to vector<8x1xf32>
    %95 = arith.divf %93, %94 : vector<8x1xf32>
    %96 = vector.broadcast %95 : vector<8x1xf32> to vector<8x128xf32>
    %97 = arith.subf %87, %96 : vector<8x128xf32>
    %98 = arith.mulf %97, %97 : vector<8x128xf32>
    %cst_39 = arith.constant dense<0.000000e+00> : vector<8xf32>
    %99 = vector.multi_reduction <add>, %98, %cst_39 [1] : vector<8x128xf32> to vector<8xf32>
    %100 = vector.shape_cast %99 : vector<8xf32> to vector<8x1xf32>
    %cst_40 = arith.constant 1.280000e+02 : f32
    %101 = vector.broadcast %cst_40 : f32 to vector<8x1xf32>
    %102 = arith.divf %100, %101 : vector<8x1xf32>
    %cst_41 = arith.constant 9.99999974E-6 : f32
    %103 = vector.broadcast %cst_41 : f32 to vector<8x1xf32>
    %104 = arith.addf %102, %103 : vector<8x1xf32>
    %105 = math.rsqrt %104 : vector<8x1xf32>
    %106 = vector.broadcast %105 : vector<8x1xf32> to vector<8x128xf32>
    %107 = arith.mulf %97, %106 : vector<8x128xf32>
    %108 = vector.broadcast %89 : vector<1x128xf32> to vector<8x128xf32>
    %109 = arith.mulf %107, %108 : vector<8x128xf32>
    %110 = vector.broadcast %91 : vector<1x128xf32> to vector<8x128xf32>
    %111 = arith.addf %109, %110 : vector<8x128xf32>
    %cst_42 = arith.constant 0.000000e+00 : f32
    %112 = vector.broadcast %cst_42 : f32 to vector<8x128xf32>
    %113 = arith.maximumf %111, %112 : vector<8x128xf32>
    %114 = arith.truncf %113 : vector<8x128xf32> to vector<8x128xbf16>
    %115 = vector.extract_strided_slice %4 {offsets = [1, 0, 0], sizes = [1, 128, 64], strides = [1, 1, 1]} : vector<3x128x64xbf16> to vector<1x128x64xbf16>
    %116 = vector.shape_cast %115 : vector<1x128x64xbf16> to vector<128x64xbf16>
    %cst_43 = arith.constant dense<0.000000e+00> : vector<8x64xf32>
    %117 = tpu.matmul %114, %116, %cst_43 {dimension_numbers = #tpu.dot_dimension_numbers<[1], [0], [0], [1], [0, 0, 1, 1], [], []>} : vector<8x128xbf16>, vector<128x64xbf16>, vector<8x64xf32> -> vector<8x64xf32>
    %118 = vector.extract_strided_slice %3 {offsets = [1, 0, 0], sizes = [1, 1, 64], strides = [1, 1, 1]} : vector<3x3x64xf32> to vector<1x1x64xf32>
    %119 = vector.shape_cast %118 : vector<1x1x64xf32> to vector<1x64xf32>
    %120 = vector.broadcast %119 : vector<1x64xf32> to vector<8x64xf32>
    %121 = arith.addf %117, %120 : vector<8x64xf32>
    %122 = vector.extract_strided_slice %3 {offsets = [1, 1, 0], sizes = [1, 1, 64], strides = [1, 1, 1]} : vector<3x3x64xf32> to vector<1x1x64xf32>
    %123 = vector.shape_cast %122 : vector<1x1x64xf32> to vector<1x64xf32>
    %124 = vector.extract_strided_slice %3 {offsets = [1, 2, 0], sizes = [1, 1, 64], strides = [1, 1, 1]} : vector<3x3x64xf32> to vector<1x1x64xf32>
    %125 = vector.shape_cast %124 : vector<1x1x64xf32> to vector<1x64xf32>
    %cst_44 = arith.constant dense<0.000000e+00> : vector<8xf32>
    %126 = vector.multi_reduction <add>, %121, %cst_44 [1] : vector<8x64xf32> to vector<8xf32>
    %127 = vector.shape_cast %126 : vector<8xf32> to vector<8x1xf32>
    %cst_45 = arith.constant 6.400000e+01 : f32
    %128 = vector.broadcast %cst_45 : f32 to vector<8x1xf32>
    %129 = arith.divf %127, %128 : vector<8x1xf32>
    %130 = vector.broadcast %129 : vector<8x1xf32> to vector<8x64xf32>
    %131 = arith.subf %121, %130 : vector<8x64xf32>
    %132 = arith.mulf %131, %131 : vector<8x64xf32>
    %cst_46 = arith.constant dense<0.000000e+00> : vector<8xf32>
    %133 = vector.multi_reduction <add>, %132, %cst_46 [1] : vector<8x64xf32> to vector<8xf32>
    %134 = vector.shape_cast %133 : vector<8xf32> to vector<8x1xf32>
    %cst_47 = arith.constant 6.400000e+01 : f32
    %135 = vector.broadcast %cst_47 : f32 to vector<8x1xf32>
    %136 = arith.divf %134, %135 : vector<8x1xf32>
    %cst_48 = arith.constant 9.99999974E-6 : f32
    %137 = vector.broadcast %cst_48 : f32 to vector<8x1xf32>
    %138 = arith.addf %136, %137 : vector<8x1xf32>
    %139 = math.rsqrt %138 : vector<8x1xf32>
    %140 = vector.broadcast %139 : vector<8x1xf32> to vector<8x64xf32>
    %141 = arith.mulf %131, %140 : vector<8x64xf32>
    %142 = vector.broadcast %123 : vector<1x64xf32> to vector<8x64xf32>
    %143 = arith.mulf %141, %142 : vector<8x64xf32>
    %144 = vector.broadcast %125 : vector<1x64xf32> to vector<8x64xf32>
    %145 = arith.addf %143, %144 : vector<8x64xf32>
    %cst_49 = arith.constant 0.000000e+00 : f32
    %146 = vector.broadcast %cst_49 : f32 to vector<8x64xf32>
    %147 = arith.maximumf %145, %146 : vector<8x64xf32>
    %148 = arith.truncf %147 : vector<8x64xf32> to vector<8x64xbf16>
    %c0_50 = arith.constant 0 : index
    %c0_51 = arith.constant 0 : index
    %149 = vector.load %arg3[%c0_50, %c0_51] : memref<8x100xf32, #tpu.memory_space<vmem>>, vector<8x100xf32>
    %150 = arith.truncf %149 : vector<8x100xf32> to vector<8x100xbf16>
    %151 = vector.broadcast %1 : vector<8x1xbf16> to vector<8x100xbf16>
    %152 = arith.mulf %150, %151 : vector<8x100xbf16>
    %c0_52 = arith.constant 0 : index
    %c0_53 = arith.constant 0 : index
    %153 = vector.load %arg7[%c0_52, %c0_53] : memref<100x128xbf16, #tpu.memory_space<vmem>>, vector<100x128xbf16>
    %cst_54 = arith.constant dense<0.000000e+00> : vector<8x128xf32>
    %154 = tpu.matmul %152, %153, %cst_54 {dimension_numbers = #tpu.dot_dimension_numbers<[1], [0], [0], [1], [0, 0, 1, 1], [], []>} : vector<8x100xbf16>, vector<100x128xbf16>, vector<8x128xf32> -> vector<8x128xf32>
    %155 = vector.extract_strided_slice %2 {offsets = [2, 0, 0], sizes = [1, 1, 128], strides = [1, 1, 1]} : vector<3x3x128xf32> to vector<1x1x128xf32>
    %156 = vector.shape_cast %155 : vector<1x1x128xf32> to vector<1x128xf32>
    %157 = vector.broadcast %156 : vector<1x128xf32> to vector<8x128xf32>
    %158 = arith.addf %154, %157 : vector<8x128xf32>
    %159 = vector.extract_strided_slice %2 {offsets = [2, 1, 0], sizes = [1, 1, 128], strides = [1, 1, 1]} : vector<3x3x128xf32> to vector<1x1x128xf32>
    %160 = vector.shape_cast %159 : vector<1x1x128xf32> to vector<1x128xf32>
    %161 = vector.extract_strided_slice %2 {offsets = [2, 2, 0], sizes = [1, 1, 128], strides = [1, 1, 1]} : vector<3x3x128xf32> to vector<1x1x128xf32>
    %162 = vector.shape_cast %161 : vector<1x1x128xf32> to vector<1x128xf32>
    %cst_55 = arith.constant dense<0.000000e+00> : vector<8xf32>
    %163 = vector.multi_reduction <add>, %158, %cst_55 [1] : vector<8x128xf32> to vector<8xf32>
    %164 = vector.shape_cast %163 : vector<8xf32> to vector<8x1xf32>
    %cst_56 = arith.constant 1.280000e+02 : f32
    %165 = vector.broadcast %cst_56 : f32 to vector<8x1xf32>
    %166 = arith.divf %164, %165 : vector<8x1xf32>
    %167 = vector.broadcast %166 : vector<8x1xf32> to vector<8x128xf32>
    %168 = arith.subf %158, %167 : vector<8x128xf32>
    %169 = arith.mulf %168, %168 : vector<8x128xf32>
    %cst_57 = arith.constant dense<0.000000e+00> : vector<8xf32>
    %170 = vector.multi_reduction <add>, %169, %cst_57 [1] : vector<8x128xf32> to vector<8xf32>
    %171 = vector.shape_cast %170 : vector<8xf32> to vector<8x1xf32>
    %cst_58 = arith.constant 1.280000e+02 : f32
    %172 = vector.broadcast %cst_58 : f32 to vector<8x1xf32>
    %173 = arith.divf %171, %172 : vector<8x1xf32>
    %cst_59 = arith.constant 9.99999974E-6 : f32
    %174 = vector.broadcast %cst_59 : f32 to vector<8x1xf32>
    %175 = arith.addf %173, %174 : vector<8x1xf32>
    %176 = math.rsqrt %175 : vector<8x1xf32>
    %177 = vector.broadcast %176 : vector<8x1xf32> to vector<8x128xf32>
    %178 = arith.mulf %168, %177 : vector<8x128xf32>
    %179 = vector.broadcast %160 : vector<1x128xf32> to vector<8x128xf32>
    %180 = arith.mulf %178, %179 : vector<8x128xf32>
    %181 = vector.broadcast %162 : vector<1x128xf32> to vector<8x128xf32>
    %182 = arith.addf %180, %181 : vector<8x128xf32>
    %cst_60 = arith.constant 0.000000e+00 : f32
    %183 = vector.broadcast %cst_60 : f32 to vector<8x128xf32>
    %184 = arith.maximumf %182, %183 : vector<8x128xf32>
    %185 = arith.truncf %184 : vector<8x128xf32> to vector<8x128xbf16>
    %186 = vector.extract_strided_slice %4 {offsets = [2, 0, 0], sizes = [1, 128, 64], strides = [1, 1, 1]} : vector<3x128x64xbf16> to vector<1x128x64xbf16>
    %187 = vector.shape_cast %186 : vector<1x128x64xbf16> to vector<128x64xbf16>
    %cst_61 = arith.constant dense<0.000000e+00> : vector<8x64xf32>
    %188 = tpu.matmul %185, %187, %cst_61 {dimension_numbers = #tpu.dot_dimension_numbers<[1], [0], [0], [1], [0, 0, 1, 1], [], []>} : vector<8x128xbf16>, vector<128x64xbf16>, vector<8x64xf32> -> vector<8x64xf32>
    %189 = vector.extract_strided_slice %3 {offsets = [2, 0, 0], sizes = [1, 1, 64], strides = [1, 1, 1]} : vector<3x3x64xf32> to vector<1x1x64xf32>
    %190 = vector.shape_cast %189 : vector<1x1x64xf32> to vector<1x64xf32>
    %191 = vector.broadcast %190 : vector<1x64xf32> to vector<8x64xf32>
    %192 = arith.addf %188, %191 : vector<8x64xf32>
    %193 = vector.extract_strided_slice %3 {offsets = [2, 1, 0], sizes = [1, 1, 64], strides = [1, 1, 1]} : vector<3x3x64xf32> to vector<1x1x64xf32>
    %194 = vector.shape_cast %193 : vector<1x1x64xf32> to vector<1x64xf32>
    %195 = vector.extract_strided_slice %3 {offsets = [2, 2, 0], sizes = [1, 1, 64], strides = [1, 1, 1]} : vector<3x3x64xf32> to vector<1x1x64xf32>
    %196 = vector.shape_cast %195 : vector<1x1x64xf32> to vector<1x64xf32>
    %cst_62 = arith.constant dense<0.000000e+00> : vector<8xf32>
    %197 = vector.multi_reduction <add>, %192, %cst_62 [1] : vector<8x64xf32> to vector<8xf32>
    %198 = vector.shape_cast %197 : vector<8xf32> to vector<8x1xf32>
    %cst_63 = arith.constant 6.400000e+01 : f32
    %199 = vector.broadcast %cst_63 : f32 to vector<8x1xf32>
    %200 = arith.divf %198, %199 : vector<8x1xf32>
    %201 = vector.broadcast %200 : vector<8x1xf32> to vector<8x64xf32>
    %202 = arith.subf %192, %201 : vector<8x64xf32>
    %203 = arith.mulf %202, %202 : vector<8x64xf32>
    %cst_64 = arith.constant dense<0.000000e+00> : vector<8xf32>
    %204 = vector.multi_reduction <add>, %203, %cst_64 [1] : vector<8x64xf32> to vector<8xf32>
    %205 = vector.shape_cast %204 : vector<8xf32> to vector<8x1xf32>
    %cst_65 = arith.constant 6.400000e+01 : f32
    %206 = vector.broadcast %cst_65 : f32 to vector<8x1xf32>
    %207 = arith.divf %205, %206 : vector<8x1xf32>
    %cst_66 = arith.constant 9.99999974E-6 : f32
    %208 = vector.broadcast %cst_66 : f32 to vector<8x1xf32>
    %209 = arith.addf %207, %208 : vector<8x1xf32>
    %210 = math.rsqrt %209 : vector<8x1xf32>
    %211 = vector.broadcast %210 : vector<8x1xf32> to vector<8x64xf32>
    %212 = arith.mulf %202, %211 : vector<8x64xf32>
    %213 = vector.broadcast %194 : vector<1x64xf32> to vector<8x64xf32>
    %214 = arith.mulf %212, %213 : vector<8x64xf32>
    %215 = vector.broadcast %196 : vector<1x64xf32> to vector<8x64xf32>
    %216 = arith.addf %214, %215 : vector<8x64xf32>
    %cst_67 = arith.constant 0.000000e+00 : f32
    %217 = vector.broadcast %cst_67 : f32 to vector<8x64xf32>
    %218 = arith.maximumf %216, %217 : vector<8x64xf32>
    %219 = arith.truncf %218 : vector<8x64xf32> to vector<8x64xbf16>
    %220 = vector.extract_strided_slice %5 {offsets = [0, 0, 0], sizes = [1, 64, 192], strides = [1, 1, 1]} : vector<3x64x192xbf16> to vector<1x64x192xbf16>
    %221 = vector.shape_cast %220 : vector<1x64x192xbf16> to vector<64x192xbf16>
    %cst_68 = arith.constant dense<0.000000e+00> : vector<8x192xf32>
    %222 = tpu.matmul %77, %221, %cst_68 {dimension_numbers = #tpu.dot_dimension_numbers<[1], [0], [0], [1], [0, 0, 1, 1], [], []>} : vector<8x64xbf16>, vector<64x192xbf16>, vector<8x192xf32> -> vector<8x192xf32>
    %223 = vector.extract_strided_slice %5 {offsets = [1, 0, 0], sizes = [1, 64, 192], strides = [1, 1, 1]} : vector<3x64x192xbf16> to vector<1x64x192xbf16>
    %224 = vector.shape_cast %223 : vector<1x64x192xbf16> to vector<64x192xbf16>
    %cst_69 = arith.constant dense<0.000000e+00> : vector<8x192xf32>
    %225 = tpu.matmul %148, %224, %cst_69 {dimension_numbers = #tpu.dot_dimension_numbers<[1], [0], [0], [1], [0, 0, 1, 1], [], []>} : vector<8x64xbf16>, vector<64x192xbf16>, vector<8x192xf32> -> vector<8x192xf32>
    %226 = arith.addf %222, %225 : vector<8x192xf32>
    %227 = vector.extract_strided_slice %5 {offsets = [2, 0, 0], sizes = [1, 64, 192], strides = [1, 1, 1]} : vector<3x64x192xbf16> to vector<1x64x192xbf16>
    %228 = vector.shape_cast %227 : vector<1x64x192xbf16> to vector<64x192xbf16>
    %cst_70 = arith.constant dense<0.000000e+00> : vector<8x192xf32>
    %229 = tpu.matmul %219, %228, %cst_70 {dimension_numbers = #tpu.dot_dimension_numbers<[1], [0], [0], [1], [0, 0, 1, 1], [], []>} : vector<8x64xbf16>, vector<64x192xbf16>, vector<8x192xf32> -> vector<8x192xf32>
    %230 = arith.addf %226, %229 : vector<8x192xf32>
    %231 = vector.extract_strided_slice %6 {offsets = [0, 0], sizes = [1, 192], strides = [1, 1]} : vector<2x192xf32> to vector<1x192xf32>
    %232 = vector.broadcast %231 : vector<1x192xf32> to vector<8x192xf32>
    %233 = arith.addf %230, %232 : vector<8x192xf32>
    %cst_71 = arith.constant 0.000000e+00 : f32
    %234 = vector.broadcast %cst_71 : f32 to vector<8x192xf32>
    %235 = arith.maximumf %233, %234 : vector<8x192xf32>
    %236 = arith.truncf %235 : vector<8x192xf32> to vector<8x192xbf16>
    %c0_72 = arith.constant 0 : index
    %c0_73 = arith.constant 0 : index
    %237 = vector.load %arg12[%c0_72, %c0_73] : memref<192x128xbf16, #tpu.memory_space<vmem>>, vector<192x128xbf16>
    %cst_74 = arith.constant dense<0.000000e+00> : vector<8x128xf32>
    %238 = tpu.matmul %236, %237, %cst_74 {dimension_numbers = #tpu.dot_dimension_numbers<[1], [0], [0], [1], [0, 0, 1, 1], [], []>} : vector<8x192xbf16>, vector<192x128xbf16>, vector<8x128xf32> -> vector<8x128xf32>
    %239 = vector.extract_strided_slice %6 {offsets = [1, 0], sizes = [1, 128], strides = [1, 1]} : vector<2x192xf32> to vector<1x128xf32>
    %240 = vector.broadcast %239 : vector<1x128xf32> to vector<8x128xf32>
    %241 = arith.addf %238, %240 : vector<8x128xf32>
    %242 = arith.truncf %241 : vector<8x128xf32> to vector<8x128xbf16>
    %c0_75 = arith.constant 0 : index
    %c0_76 = arith.constant 0 : index
    %243 = vector.load %arg14[%c0_75, %c0_76] : memref<8x128xbf16, #tpu.memory_space<vmem>>, vector<8x128xbf16>
    tpu.vector_store %arg14[%c0_75, %c0_76], %242 {strides = array<i32>} : memref<8x128xbf16, #tpu.memory_space<vmem>>, vector<8x128xbf16>,
    return
  }
  func.func @transform_0(%arg0: i32) -> (i32, i32) {
    %c0_i32 = arith.constant 0 : i32
    %c0_i32_0 = arith.constant 0 : i32
    return %arg0, %c0_i32 : i32, i32
  }
  func.func @transform_1(%arg0: i32) -> (i32, i32) {
    %c0_i32 = arith.constant 0 : i32
    %c0_i32_0 = arith.constant 0 : i32
    return %arg0, %c0_i32 : i32, i32
  }
  func.func @transform_2(%arg0: i32) -> (i32, i32) {
    %c0_i32 = arith.constant 0 : i32
    %c0_i32_0 = arith.constant 0 : i32
    return %arg0, %c0_i32 : i32, i32
  }
  func.func @transform_3(%arg0: i32) -> (i32, i32) {
    %c0_i32 = arith.constant 0 : i32
    %c0_i32_0 = arith.constant 0 : i32
    return %arg0, %c0_i32 : i32, i32
  }
  func.func @transform_4(%arg0: i32) -> (i32, i32) {
    %c0_i32 = arith.constant 0 : i32
    %c0_i32_0 = arith.constant 0 : i32
    %c0_i32_1 = arith.constant 0 : i32
    return %c0_i32, %c0_i32_0 : i32, i32
  }
  func.func @transform_5(%arg0: i32) -> (i32, i32) {
    %c0_i32 = arith.constant 0 : i32
    %c0_i32_0 = arith.constant 0 : i32
    %c0_i32_1 = arith.constant 0 : i32
    return %c0_i32, %c0_i32_0 : i32, i32
  }
  func.func @transform_6(%arg0: i32) -> (i32, i32) {
    %c0_i32 = arith.constant 0 : i32
    %c0_i32_0 = arith.constant 0 : i32
    %c0_i32_1 = arith.constant 0 : i32
    return %c0_i32, %c0_i32_0 : i32, i32
  }
  func.func @transform_7(%arg0: i32) -> (i32, i32, i32) {
    %c0_i32 = arith.constant 0 : i32
    %c0_i32_0 = arith.constant 0 : i32
    %c0_i32_1 = arith.constant 0 : i32
    %c0_i32_2 = arith.constant 0 : i32
    return %c0_i32, %c0_i32_0, %c0_i32_1 : i32, i32, i32
  }
  func.func @transform_8(%arg0: i32) -> (i32, i32, i32) {
    %c0_i32 = arith.constant 0 : i32
    %c0_i32_0 = arith.constant 0 : i32
    %c0_i32_1 = arith.constant 0 : i32
    %c0_i32_2 = arith.constant 0 : i32
    return %c0_i32, %c0_i32_0, %c0_i32_1 : i32, i32, i32
  }
  func.func @transform_9(%arg0: i32) -> (i32, i32, i32) {
    %c0_i32 = arith.constant 0 : i32
    %c0_i32_0 = arith.constant 0 : i32
    %c0_i32_1 = arith.constant 0 : i32
    %c0_i32_2 = arith.constant 0 : i32
    return %c0_i32, %c0_i32_0, %c0_i32_1 : i32, i32, i32
  }
  func.func @transform_10(%arg0: i32) -> (i32, i32, i32) {
    %c0_i32 = arith.constant 0 : i32
    %c0_i32_0 = arith.constant 0 : i32
    %c0_i32_1 = arith.constant 0 : i32
    %c0_i32_2 = arith.constant 0 : i32
    return %c0_i32, %c0_i32_0, %c0_i32_1 : i32, i32, i32
  }
  func.func @transform_11(%arg0: i32) -> (i32, i32) {
    %c0_i32 = arith.constant 0 : i32
    %c0_i32_0 = arith.constant 0 : i32
    %c0_i32_1 = arith.constant 0 : i32
    return %c0_i32, %c0_i32_0 : i32, i32
  }
  func.func @transform_12(%arg0: i32) -> (i32, i32) {
    %c0_i32 = arith.constant 0 : i32
    %c0_i32_0 = arith.constant 0 : i32
    %c0_i32_1 = arith.constant 0 : i32
    return %c0_i32, %c0_i32_0 : i32, i32
  }
  func.func @transform_13(%arg0: i32) -> (i32, i32) {
    %c0_i32 = arith.constant 0 : i32
    %c0_i32_0 = arith.constant 0 : i32
    return %arg0, %c0_i32 : i32, i32
  }
}

</mosaic_0001>

<bundles_post_ra>
// kernel: tpu_custom_call.1
= control target key start
LH: loop header
LB: loop body
LE: loop exit
PB: predicated region body
PF: predicated region fallthrough
CT: control target
= control target key end

     0   :  { %18 = vsyncpa [#allocation3], 0  ;;  %s2366_s0 = inlined_call_operand.hbm [shape: f32[8,100], index: 0, kind: input, shape index: {}]   ;;  %s2367_s1 = inlined_call_operand.hbm [shape: f32[8,73], index: 1, kind: input, shape index: {}]   ;;  %s2368_s2 = inlined_call_operand.hbm [shape: f32[8,100], index: 2, kind: input, shape index: {}]   ;;  %s2369_s3 = inlined_call_operand.vmem [shape: f32[8,1], index: 3, kind: input, shape index: {}]   ;;  %s2370_s4 = inlined_call_operand.hbm [shape: bf16[100,128], index: 4, kind: input, shape index: {}]   ;;  %s2371_s5 = inlined_call_operand.hbm [shape: bf16[73,128], index: 5, kind: input, shape index: {}]   ;;  %s2372_s6 = inlined_call_operand.hbm [shape: bf16[100,128], index: 6, kind: input, shape index: {}]   ;;  %s2373_s7 = inlined_call_operand.vmem [shape: f32[3,3,128], index: 7, kind: input, shape index: {}]   ;;  %s2374_s8 = inlined_call_operand.vmem [shape: bf16[3,128,64], index: 8, kind: input, shape index: {}]   ;;  %s2375_s9 = inlined_call_operand.vmem [shape: f32[3,3,64], index: 9, kind: input, shape index: {}]   ;;  %s2376_s10 = inlined_call_operand.vmem [shape: bf16[3,64,192], index: 10, kind: input, shape index: {}]   ;;  %s2377_s11 = inlined_call_operand.vmem [shape: bf16[192,128], index: 11, kind: input, shape index: {}]   ;;  %s2378_s12 = inlined_call_operand.vmem [shape: f32[2,192], index: 12, kind: input, shape index: {}]   ;;  %s2379_s13 = inlined_call_operand.hbm [shape: bf16[8,128], index: 13, kind: output, shape index: {}]  }
   0x1   :  { %19 = vsyncpa [#allocation6], 0 }
   0x2   :  { %20 = vsyncpa [#allocation9], 0 }
   0x3   :  { %21 = vsyncpa [#allocation12], 0 }
   0x4   :  { %22 = vsyncpa [#allocation4], 0  ;;  %s1894_s25 = smov [#allocation5]   ;;  %s1895_s27 = smov [#allocation8]  }
   0x5   :  { %s39_s26 = sshll.u32 %s1894_s25, 4  ;;  %s60_s28 = sshll.u32 %s1895_s27, 4  ;;  %s40_s26 = int_to_ptr.vmem [resolvable:$true] %s39_s26  ;;  %s61_s28 = int_to_ptr.vmem [resolvable:$true] %s60_s28 }
   0x6   :  { %s1752_s29 = scalar_lea.vmem %s40_s26, 128  ;;  %p1757_p1 = scmp.lt.s32.totalorder %s40_s26, %s40_s26 }
   0x7   :  { %p1753_p0 = scmp.ne.s32.totalorder %s40_s26, %s1752_s29  ;;  %p1758_p2 = scmp.lt.s32.totalorder %s1752_s29, %s1752_s29 }
   0x9   :  { %p1759_p3 = por %p1758_p2, %p1757_p1 }
   0xb   :  { %p1760_p4 = pnand %p1759_p3, %p1753_p0 }
   0xd   :  { %1763 = shalt.err (!%p1760_p4)
}
   0xe   :  { %42 = dma.hbm_to_vmem [thread:$0]  %s2367_s1, 128, %s40_s26, [#allocation6]  }
   0xf   :  { %s1772_s15 = scalar_lea.vmem %s61_s28, 832  ;;  %p1777_p6 = scmp.lt.s32.totalorder %s61_s28, %s61_s28 }
  0x10   :  { %p1773_p5 = scmp.ne.s32.totalorder %s61_s28, %s1772_s15  ;;  %p1778_p7 = scmp.lt.s32.totalorder %s1772_s15, %s1772_s15 }
  0x12   :  { %p1779_p8 = por %p1778_p7, %p1777_p6 }
  0x14   :  { %p1780_p9 = pnand %p1779_p8, %p1773_p5 }
  0x16   :  { %1783 = shalt.err (!%p1780_p9)
}
  0x17   :  { %s1896_s16 = smov 64   ;;  %s1897_s17 = smov 4  }
  0x18   :  { %66 = dma.hbm_to_vmem [thread:$0]  %s2370_s4, 832, %s61_s28, [#allocation9], %s1896_s16, %s1896_s16, %s1897_s17  }
  0x19   :  { %s1898_s20 = smov [#allocation2]   ;;  %s1899_s22 = smov [#allocation7]  }
  0x1a   :  { %s29_s21 = sshll.u32 %s1898_s20, 4  ;;  %s49_s1 = sshll.u32 %s1899_s22, 4  ;;  %s30_s21 = int_to_ptr.vmem [resolvable:$true] %s29_s21  ;;  %s50_s1 = int_to_ptr.vmem [resolvable:$true] %s49_s1 }
  0x1b   :  { %s1792_s23 = scalar_lea.vmem %s30_s21, 128  ;;  %p1797_p11 = scmp.lt.s32.totalorder %s30_s21, %s30_s21 }
  0x1c   :  { %p1793_p10 = scmp.ne.s32.totalorder %s30_s21, %s1792_s23  ;;  %p1798_p12 = scmp.lt.s32.totalorder %s1792_s23, %s1792_s23 }
  0x1e   :  { %p1799_p13 = por %p1798_p12, %p1797_p11 }
  0x20   :  { %p1800_p0 = pnand %p1799_p13, %p1793_p10 }
  0x22   :  { %1803 = shalt.err (!%p1800_p0)
}
  0x23   :  { %32 = dma.hbm_to_vmem [thread:$0]  %s2366_s0, 128, %s30_s21, [#allocation3]  }
  0x24   :  { %s1812_s26 = scalar_lea.vmem %s50_s1, 128  ;;  %p1817_p2 = scmp.lt.s32.totalorder %s50_s1, %s50_s1 }
  0x25   :  { %p1813_p1 = scmp.ne.s32.totalorder %s50_s1, %s1812_s26  ;;  %p1818_p3 = scmp.lt.s32.totalorder %s1812_s26, %s1812_s26 }
  0x27   :  { %p1819_p4 = por %p1818_p3, %p1817_p2 }
  0x29   :  { %p1820_p5 = pnand %p1819_p4, %p1813_p1 }
  0x2b   :  { %1823 = shalt.err (!%p1820_p5)
}
  0x2c   :  { %52 = dma.hbm_to_vmem [thread:$0]  %s2368_s2, 128, %s50_s1, [#allocation6]  }
  0x2d   :  { %s1900_s28 = smov [#allocation10]   ;;  %s1901_s30 = smov [#allocation11]  }
  0x2e   :  { %s72_s29 = sshll.u32 %s1900_s28, 4  ;;  %s84_s14 = sshll.u32 %s1901_s30, 4  ;;  %s73_s29 = int_to_ptr.vmem [resolvable:$true] %s72_s29  ;;  %s85_s14 = int_to_ptr.vmem [resolvable:$true] %s84_s14 }
  0x2f   :  { %s1832_s15 = scalar_lea.vmem %s73_s29, 640  ;;  %p1837_p7 = scmp.lt.s32.totalorder %s73_s29, %s73_s29 }
  0x30   :  { %p1833_p6 = scmp.ne.s32.totalorder %s73_s29, %s1832_s15  ;;  %p1838_p8 = scmp.lt.s32.totalorder %s1832_s15, %s1832_s15 }
  0x32   :  { %p1839_p9 = por %p1838_p8, %p1837_p7 }
  0x34   :  { %p1840_p10 = pnand %p1839_p9, %p1833_p6 }
  0x36   :  { %1843 = shalt.err (!%p1840_p10)
}
  0x37   :  { %78 = dma.hbm_to_vmem [thread:$0]  %s2371_s5, 640, %s73_s29, [#allocation9], %s1896_s16, %s1896_s16, %s1897_s17  }
  0x38   :  { %s1852_s2 = scalar_lea.vmem %s85_s14, 832  ;;  %p1857_p12 = scmp.lt.s32.totalorder %s85_s14, %s85_s14 }
  0x39   :  { %p1853_p11 = scmp.ne.s32.totalorder %s85_s14, %s1852_s2  ;;  %p1858_p13 = scmp.lt.s32.totalorder %s1852_s2, %s1852_s2 }
  0x3b   :  { %p1859_p0 = por %p1858_p13, %p1857_p12 }
  0x3d   :  { %p1860_p1 = pnand %p1859_p0, %p1853_p11 }
  0x3f   :  { %1863 = shalt.err (!%p1860_p1)
}
  0x40   :  { %90 = dma.hbm_to_vmem [thread:$0]  %s2372_s6, 832, %s85_s14, [#allocation12], %s1896_s16, %s1896_s16, %s1897_s17  }
  0x41   :  { %1884 = dma.done.wait [#allocation3], 128  }
  0x42   :  { %1885 = vsyncadd [#allocation3], 4294967168 }
  0x43   :  { %1886 = dma.done.wait [#allocation6], 256  }
  0x44   :  { %1887 = vsyncadd [#allocation6], 4294967040 }
  0x45   :  { %1888 = dma.done.wait [#allocation9], 1472  }
  0x46   :  { %1889 = vsyncadd [#allocation9], 4294965824 }
  0x47   :  { %1890 = dma.done.wait [#allocation12], 832  }
  0x48   :  { %1891 = vsyncadd [#allocation12], 4294966464  ;;  %v1902_v0 = vmov 0   ;;  %v1903_v1 = vmov 0.0   ;;  %vm271_vm0 = vcmask 1041408   ;;  %v122_v2 = vld [vmem:[%s2369_s3] sm:$0xff]  ;;  %v224_v27 = vlaneseq }
  0x49   :  { %1640 = vset.pattern.permute.xlu0 %v1902_v0  ;;  %1517 = vmatprep.subr.bf16.mxu0 %v1903_v1  ;;  %v1641_v3 = vld [vmem:[#allocation8 + $0x30] ss:$0 sps:$4 sm:$0x33]   ;;  %vm1904_vm1 = vmmov 0   ;;  %v123_v4 = vpack.c.bf16 %v122_v2, %v122_v2  ;;  %v1643_v6 = vld [vmem:[#allocation8 + $0x28] sm:$0xff]   ;;  %v1644_v7 = vld [vmem:[#allocation8 + $0x20] sm:$0xff]  }
  0x4a   :  { %1535 = vmatprep.subr.bf16.mxu1 %v1903_v1  ;;  %1531 = vmatprep.mubr.msk.bf16.mxu0 %vm1904_vm1, %v1903_v1  ;;  %v273_v5 = vsel %vm271_vm0, %v1641_v3, 0  ;;  %v1645_v8 = vld [vmem:[#allocation8 + $0x18] sm:$0xff]   ;;  %v1646_v9 = vld [vmem:[#allocation8 + $0x10] sm:$0xff]   ;;  %v1647_v10 = vld [vmem:[#allocation8 + $0x8] sm:$0xff]   ;;  %vm267_vm2 = vcmask 818176   ;;  %v225_v28 = vshrl.u32 %v224_v27, 7 }
  0x4b   :  { %1551 = vmatprep.mubr.msk.bf16.mxu1 %vm1904_vm1, %v1903_v1  ;;  %207 = vperm.xlu0 %1640, %v123_v4   ;;  %v1648_v11 = vld [vmem:[#allocation8] sm:$0xff]   ;;  %v203_v12 = vld [vmem:[#allocation2] sm:$0xff]  ;;  %v1651_v20 = vld [vmem:[#allocation11 + $0x18] sm:$0xff]   ;;  %vm508_vm3 = vcmask 1043456   ;;  %vm509_vm4 = vcmask 1044480   ;;  %v1905_v62 = vmov 65535  }
  0x4c   :  { %1518 = vmatpush3.bf16.msra.mxu0 %v273_v5  ;;  %v1642_v13 = vld [vmem:[#allocation11 + $0x30] ss:$0 sps:$4 sm:$0x33]   ;;  %v204_v14 = vpack.c.bf16 %v203_v12, %v203_v12  ;;  %v1649_v18 = vld [vmem:[#allocation11 + $0x28] sm:$0xff]   ;;  %v1650_v19 = vld [vmem:[#allocation11 + $0x20] sm:$0xff]   ;;  %v2038_v29 = vsub.s32 0, %v225_v28 }
  0x4d   :  { %1519 = vmatprep.subr.bf16.mxu0 %v1903_v1  ;;  %v758_v16 = vsel %vm271_vm0, %v1642_v13, 0  ;;  %v1652_v21 = vld [vmem:[#allocation11 + $0x10] sm:$0xff]   ;;  %v1653_v22 = vld [vmem:[#allocation11 + $0x8] sm:$0xff]   ;;  %v695_v23 = vld [vmem:[#allocation7] sm:$0xff]  ;;  %v2078_v56 = vsub.s32 1, %v225_v28  ;;  %v2080_v57 = vsub.s32 2, %v225_v28 }
  0x4e   :  { %v1654_v24 = vld [vmem:[#allocation11] sm:$0xff]   ;;  %v696_v25 = vpack.c.bf16 %v695_v23, %v695_v23  ;;  %v124_v30 = vld [vmem:[%s2373_s7] sm:$0x7]  ;;  %v1657_v47 = vld [vmem:[%s2374_s8 + $0x28] sm:$0xff]   ;;  %v510_v63 = vsel %vm508_vm3, 4294967295, %v1905_v62  ;;  %vm504_vm5 = vcmask 596992  }
  0x4f   :  { %v227_v31 = vrot.slane %v124_v30, %v2038_v29  ;;  %v1655_v37 = vld [vmem:[%s2374_s8 + $0x38] sm:$0xff]   ;;  %v1656_v46 = vld [vmem:[%s2374_s8 + $0x30] sm:$0xff]   ;;  %v1658_v48 = vld [vmem:[%s2374_s8 + $0x20] sm:$0xff]   ;;  %v330_v58 = vrot.slane %v124_v30, %v2078_v56  ;;  %v335_v61 = vrot.slane %v124_v30, %v2080_v57  ;;  %v511_v5 = vsel %vm509_vm4, %v510_v63, 0 }
  0x50   :  { %1520 = vmatpush3.bf16.msra.mxu0 %v1643_v6  ;;  %1536 = vmatpush3.bf16.msra.mxu1 %v1655_v37  ;;  %v1659_v49 = vld [vmem:[%s2374_s8 + $0x18] sm:$0xff]   ;;  %v1660_v50 = vld [vmem:[%s2374_s8 + $0x10] sm:$0xff]   ;;  %v1661_v51 = vld [vmem:[%s2374_s8 + $0x8] sm:$0xff]   ;;  %vm431_vm6 = vcmask 523264  }
  0x51   :  { %1521 = vmatprep.subr.bf16.mxu0 %v1903_v1  ;;  %1537 = vmatprep.subr.bf16.mxu1 %v1903_v1  ;;  %v1662_v52 = vld [vmem:[%s2374_s8] sm:$0xff]   ;;  %v1663_v3 = vld [vmem:[#allocation10 + $0x20] sm:$0x1f]   ;;  %v1676_v62 = vld [vmem:[%s2374_s8 + $0xb8] sm:$0xff]  }
  0x52   :  { %v458_v12 = vld [vmem:[#allocation5] sm:$0xff] }
  0x53   :  { %v1667_v13 = vld [vmem:[#allocation10] sm:$0xff]  }
  0x54   :  { %1522 = vmatpush3.bf16.msra.mxu0 %v1644_v7  ;;  %1538 = vmatpush3.bf16.msra.mxu1 %v1656_v46  ;;  %v513_v7 = vand.u32 %v1663_v3, %v511_v5  ;;  %v1675_v46 = vld [vmem:[%s2374_s8 + $0x40] sm:$0xff]   ;;  %v1678_v3 = vld [vmem:[%s2374_s8 + $0xa8] sm:$0xff]  }
  0x55   :  { %1523 = vmatprep.subr.bf16.mxu0 %v1903_v1  ;;  %1539 = vmatprep.subr.bf16.mxu1 %v1903_v1 }
  0x58   :  { %1524 = vmatpush3.bf16.msra.mxu0 %v1645_v8  ;;  %1540 = vmatpush3.bf16.msra.mxu1 %v1657_v47 }
  0x59   :  { %1525 = vmatprep.subr.bf16.mxu0 %v1903_v1  ;;  %1541 = vmatprep.subr.bf16.mxu1 %v1903_v1 }
  0x5c   :  { %1526 = vmatpush3.bf16.msra.mxu0 %v1646_v9  ;;  %1542 = vmatpush3.bf16.msra.mxu1 %v1658_v48  ;;  %v1664_v9 = vld [vmem:[#allocation10 + $0x18] sm:$0xff]  }
  0x5d   :  { %1527 = vmatprep.subr.bf16.mxu0 %v1903_v1  ;;  %1543 = vmatprep.subr.bf16.mxu1 %v1903_v1 }
  0x60   :  { %1528 = vmatpush3.bf16.msra.mxu0 %v1647_v10  ;;  %1544 = vmatpush3.bf16.msra.mxu1 %v1659_v49  ;;  %v1665_v10 = vld [vmem:[#allocation10 + $0x10] sm:$0xff]  }
  0x61   :  { %1529 = vmatprep.subr.bf16.mxu0 %v1903_v1  ;;  %1545 = vmatprep.subr.bf16.mxu1 %v1903_v1 }
  0x64   :  { %1530 = vmatpush3.bf16.msra.mxu0 %v1648_v11  ;;  %1546 = vmatpush3.bf16.msra.mxu1 %v1660_v50  ;;  %v1666_v11 = vld [vmem:[#allocation10 + $0x8] sm:$0xff]  }
  0x65   :  { %1589 = vmatprep.subr.bf16.mxu0 %v1903_v1  ;;  %1547 = vmatprep.subr.bf16.mxu1 %v1903_v1 }
  0x68   :  { %1548 = vmatpush3.bf16.msra.mxu1 %v1661_v51 }
  0x69   :  { %1549 = vmatprep.subr.bf16.mxu1 %v1903_v1 }
  0x6c   :  { %1550 = vmatpush3.bf16.msra.mxu1 %v1662_v52 }
  0x6d   :  { %1555 = vmatprep.subr.bf16.mxu1 %v1903_v1 }
  0xc6   :  { %v2022_v15 = vpop.permute.xlu0 %207 }
  0xc7   :  { %v210_v17 = vmul.bf16 %v2022_v15, %v204_v14  ;;  %v697_v26 = vmul.bf16 %v696_v25, %v2022_v15  ;;  %v459_v14 = vpack.c.bf16 %v458_v12, %v458_v12  ;;  %v1682_v12 = vld [vmem:[%s2374_s8 + $0x88] sm:$0xff]  }
  0xc9   :  { %1532 = vmatmul.mubr.msk.bf16.vlgmr.msra.gmra.mxu0 %vm267_vm2, %v210_v17 }
  0xca   :  { %1590 = vmatpush3.bf16.msra.mxu0 %v758_v16  ;;  %1603 = vmatprep.mubr.msk.bf16.mxu0 %vm1904_vm1, %v1903_v1  ;;  %v460_v16 = vmul.bf16 %v459_v14, %v2022_v15  ;;  %v2103_v15 = vld [vmem:[%s2373_s7 + $0x8] sm:$0x7]  ;;  %v1683_v14 = vld [vmem:[%s2374_s8 + $0x80] sm:$0xff]  }
  0xcb   :  { %1591 = vmatprep.subr.bf16.mxu0 %v1903_v1 }
  0xce   :  { %1592 = vmatpush3.bf16.msra.mxu0 %v1649_v18 }
  0xcf   :  { %1593 = vmatprep.subr.bf16.mxu0 %v1903_v1 }
  0xd2   :  { %1594 = vmatpush3.bf16.msra.mxu0 %v1650_v19 }
  0xd3   :  { %1595 = vmatprep.subr.bf16.mxu0 %v1903_v1 }
  0xd6   :  { %1596 = vmatpush3.bf16.msra.mxu0 %v1651_v20 }
  0xd7   :  { %1597 = vmatprep.subr.bf16.mxu0 %v1903_v1 }
  0xda   :  { %1598 = vmatpush3.bf16.msra.mxu0 %v1652_v21  ;;  %v125_v21 = vld [vmem:[%s2373_s7 + $0x4] sm:$0x7] }
  0xdb   :  { %1599 = vmatprep.subr.bf16.mxu0 %v1903_v1  ;;  %v569_v51 = vrot.slane %v125_v21, %v2078_v56 }
  0xde   :  { %1600 = vmatpush3.bf16.msra.mxu0 %v1653_v22  ;;  %v474_v22 = vrot.slane %v125_v21, %v2038_v29 }
  0xdf   :  { %1601 = vmatprep.subr.bf16.mxu0 %v1903_v1 }
  0xe2   :  { %1602 = vmatpush3.bf16.msra.mxu0 %v1654_v24  ;;  %v714_v24 = vrot.slane %v2103_v15, %v2038_v29 }
  0xe5   :  { %1604 = vmatmul.mubr.msk.bf16.vlgmr.msra.gmra.mxu0 %vm267_vm2, %v697_v26 }
  0xe6   :  { %1015 = vmatprep.mubr.bf16.mxu0 %v1902_v0 }
 0x189   :  { %v309_v32 = vpop.f32.mrf.mxu0 }
 0x18a   :  { %v310_v33 = vadd.f32 %v309_v32, %v227_v31  ;;  %v1668_v31 = vld [vmem:[%s2374_s8 + $0x78] sm:$0xff]  }
 0x18b   :  { %v1533_v34 = vpop.f32.mrf.mxu0 }
 0x18c   :  { %315 = vadd.xlane.f32.xlu0 %v310_v33 }
 0x18d   :  { %v312_v35 = vpop.f32.mrf.mxu0 }
 0x18f   :  { %v1534_v36 = vpop.f32.mrf.mxu0 }
 0x1a5   :  { %v2048_v38 = vpop.f32.mrf.mxu0 }
 0x1a6   :  { %v795_v28 = vadd.f32 %v2048_v38, %v714_v24  ;;  %v1669_v38 = vld [vmem:[%s2374_s8 + $0x70] sm:$0xff]  }
 0x1a7   :  { %v1605_v39 = vpop.f32.mrf.mxu0 }
 0x1a9   :  { %v797_v40 = vpop.f32.mrf.mxu0 }
 0x1ab   :  { %v1606_v41 = vpop.f32.mrf.mxu0 }
 0x1ac   :  { %v1670_v41 = vld [vmem:[%s2374_s8 + $0x68] sm:$0xff]  }
 0x215   :  { %v316_v42 = vpop.xlane.xlu0 %315 }
 0x216   :  { %v318_v43 = vmul.f32 0.0078125, %v316_v42  ;;  %v1671_v42 = vld [vmem:[%s2374_s8 + $0x60] sm:$0xff]  }
 0x218   :  { %v319_v44 = vsub.f32 %v310_v33, %v318_v43  ;;  %v1672_v43 = vld [vmem:[%s2374_s8 + $0x58] sm:$0xff]  }
 0x21a   :  { %v320_v45 = vmul.f32 %v319_v44, %v319_v44 }
 0x21c   :  { %321 = vadd.xlane.f32.xlu1 %v320_v45  ;;  %v1674_v45 = vld [vmem:[%s2374_s8 + $0x48] sm:$0xff]  }
 0x2a5   :  { %v322_v53 = vpop.xlane.xlu1 %321 }
 0x2a6   :  { %v323_v54 = vmul.f32 0.0078125, %v322_v53  ;;  %v574_v53 = vrot.slane %v125_v21, %v2080_v57 }
 0x2a8   :  { %v324_v55 = vadd.f32 1e-05, %v323_v54 }
 0x2aa   :  { %1732 = vrsqrt.f32 %v324_v55 }
 0x2b7   :  { %v1733_v59 = vpop.eup %1732 }
 0x2b8   :  { %v326_v60 = vmul.f32 %v1733_v59, %v319_v44  ;;  %v1673_v44 = vld [vmem:[%s2374_s8 + $0x50] sm:$0xff]  }
 0x2ba   :  { %v331_v2 = vmul.f32 %v330_v58, %v326_v60 }
 0x2bc   :  { %v336_v4 = vadd.f32 %v335_v61, %v331_v2  ;;  %v1677_v2 = vld [vmem:[%s2374_s8 + $0xb0] sm:$0xff]  }
 0x2be   :  { %v337_v6 = vmax.f32 %v336_v4, 0.0  ;;  %v1679_v4 = vld [vmem:[%s2374_s8 + $0xa0] sm:$0xff]  }
 0x2c0   :  { %v338_v8 = vpack.c.bf16 %v337_v6, %v337_v6  ;;  %v1680_v6 = vld [vmem:[%s2374_s8 + $0x98] sm:$0xff]  }
 0x2c2   :  { %1552 = vmatmul.mubr.bf16.vlgmr.msra.gmra.mxu1 %v338_v8 }
 0x2c3   :  { %1556 = vmatpush3.bf16.msra.mxu1 %v513_v7  ;;  %1565 = vmatprep.mubr.msk.bf16.mxu1 %vm1904_vm1, %v1903_v1  ;;  %v814_v7 = vrot.slane %v2103_v15, %v2078_v56 }
 0x2c4   :  { %1557 = vmatprep.subr.bf16.mxu1 %v1903_v1 }
 0x2c7   :  { %1558 = vmatpush3.bf16.msra.mxu1 %v1664_v9  ;;  %v1681_v9 = vld [vmem:[%s2374_s8 + $0x90] sm:$0xff]  }
 0x2c8   :  { %1559 = vmatprep.subr.bf16.mxu1 %v1903_v1 }
 0x2cb   :  { %1560 = vmatpush3.bf16.msra.mxu1 %v1665_v10  ;;  %v819_v10 = vrot.slane %v2103_v15, %v2080_v57 }
 0x2cc   :  { %1561 = vmatprep.subr.bf16.mxu1 %v1903_v1 }
 0x2cf   :  { %1562 = vmatpush3.bf16.msra.mxu1 %v1666_v11 }
 0x2d0   :  { %1563 = vmatprep.subr.bf16.mxu1 %v1903_v1 }
 0x2d3   :  { %1564 = vmatpush3.bf16.msra.mxu1 %v1667_v13 }
 0x2d4   :  { %1569 = vmatprep.subr.bf16.mxu1 %v1903_v1 }
 0x2d6   :  { %1566 = vmatmul.mubr.msk.bf16.vlgmr.msra.gmra.mxu1 %vm504_vm5, %v460_v16 }
 0x2d7   :  { %1585 = vmatprep.mubr.msk.bf16.mxu1 %vm1904_vm1, %v1903_v1  ;;  %1570 = vmatpush3.bf16.msra.mxu1 %v1668_v31 }
 0x2d8   :  { %1571 = vmatprep.subr.bf16.mxu1 %v1903_v1 }
 0x2db   :  { %1572 = vmatpush3.bf16.msra.mxu1 %v1669_v38 }
 0x2dc   :  { %1573 = vmatprep.subr.bf16.mxu1 %v1903_v1 }
 0x2df   :  { %1574 = vmatpush3.bf16.msra.mxu1 %v1670_v41 }
 0x2e0   :  { %1575 = vmatprep.subr.bf16.mxu1 %v1903_v1 }
 0x2e3   :  { %1576 = vmatpush3.bf16.msra.mxu1 %v1671_v42 }
 0x2e4   :  { %1577 = vmatprep.subr.bf16.mxu1 %v1903_v1 }
 0x2e7   :  { %1578 = vmatpush3.bf16.msra.mxu1 %v1672_v43 }
 0x2e8   :  { %1579 = vmatprep.subr.bf16.mxu1 %v1903_v1 }
 0x2eb   :  { %1580 = vmatpush3.bf16.msra.mxu1 %v1673_v44 }
 0x2ec   :  { %1581 = vmatprep.subr.bf16.mxu1 %v1903_v1 }
 0x2ef   :  { %1582 = vmatpush3.bf16.msra.mxu1 %v1674_v45 }
 0x2f0   :  { %1583 = vmatprep.subr.bf16.mxu1 %v1903_v1 }
 0x2f3   :  { %1584 = vmatpush3.bf16.msra.mxu1 %v1675_v46 }
 0x2f4   :  { %1607 = vmatprep.subr.bf16.mxu1 %v1903_v1 }
 0x382   :  { %v2094_v17 = vpop.f32.mrf.mxu1 }
 0x384   :  { %v1553_v18 = vpop.f32.mrf.mxu1 }
 0x386   :  { %v428_v19 = vpop.f32.mrf.mxu1 }
 0x387   :  { %v2183_v19 = vld [vmem:[%s2375_s9 + $0x4] sm:$0x7] }
 0x388   :  { %v1554_v20 = vpop.f32.mrf.mxu1  ;;  %v581_v21 = vrot.slane %v2183_v19, %v2038_v29 }
 0x389   :  { %v2188_v20 = vld [vmem:[%s2375_s9] sm:$0x7] }
 0x396   :  { %v549_v23 = vpop.f32.mrf.mxu1 }
 0x397   :  { %v550_v25 = vadd.f32 %v549_v23, %v474_v22 }
 0x398   :  { %v1567_v26 = vpop.f32.mrf.mxu1 }
 0x399   :  { %555 = vadd.xlane.f32.xlu1 %v550_v25 }
 0x39a   :  { %v552_v27 = vpop.f32.mrf.mxu1 }
 0x39c   :  { %v1568_v30 = vpop.f32.mrf.mxu1 }
 0x39d   :  { %800 = vadd.xlane.f32.xlu1 %v795_v28  ;;  %v2200_v30 = vld [vmem:[%s2375_s9 + $0x8] sm:$0x7] }
 0x39e   :  { %v826_v31 = vrot.slane %v2200_v30, %v2038_v29 }
 0x422   :  { %v556_v32 = vpop.xlane.xlu1 %555 }
 0x423   :  { %v557_v33 = vmul.f32 0.0078125, %v556_v32 }
 0x425   :  { %v558_v34 = vsub.f32 %v550_v25, %v557_v33 }
 0x426   :  { %v801_v35 = vpop.xlane.xlu1 %800 }
 0x427   :  { %v802_v36 = vmul.f32 0.0078125, %v801_v35  ;;  %v559_v37 = vmul.f32 %v558_v34, %v558_v34 }
 0x429   :  { %v803_v39 = vsub.f32 %v795_v28, %v802_v36  ;;  %560 = vadd.xlane.f32.xlu1 %v559_v37 }
 0x42b   :  { %v804_v40 = vmul.f32 %v803_v39, %v803_v39 }
 0x42d   :  { %805 = vadd.xlane.f32.xlu1 %v804_v40 }
 0x4b2   :  { %v561_v47 = vpop.xlane.xlu1 %560 }
 0x4b3   :  { %v562_v48 = vmul.f32 0.0078125, %v561_v47  ;;  %v1686_v47 = vld [vmem:[%s2376_s10 + $0x74] ss:$8 sps:$4 sm:$0xff]  }
 0x4b4   :  { %991 = vmatprep.subr.bf16.mxu0 %v1686_v47 }
 0x4b5   :  { %v563_v49 = vadd.f32 1e-05, %v562_v48  ;;  %v1684_v48 = vld [vmem:[%s2376_s10 + $0x70] ss:$8 sps:$4 sm:$0xff]  }
 0x4b6   :  { %v806_v50 = vpop.xlane.xlu1 %805  ;;  %992 = vmatpush1.bf16.msra.mxu0 %v1684_v48 }
 0x4b7   :  { %1734 = vrsqrt.f32 %v563_v49  ;;  %v807_v54 = vmul.f32 0.0078125, %v806_v50  ;;  %v1689_v50 = vld [vmem:[%s2376_s10 + $0x64] ss:$8 sps:$4 sm:$0xff]  }
 0x4b8   :  { %993 = vmatprep.subr.bf16.mxu0 %v1689_v50 }
 0x4b9   :  { %v808_v59 = vadd.f32 1e-05, %v807_v54  ;;  %v1692_v54 = vld [vmem:[%s2376_s10 + $0x54] ss:$8 sps:$4 sm:$0xff]  }
 0x4bb   :  { %1736 = vrsqrt.f32 %v808_v59 }
 0x4c4   :  { %v1735_v52 = vpop.eup %1734 }
 0x4c5   :  { %v565_v55 = vmul.f32 %v1735_v52, %v558_v34  ;;  %v1687_v52 = vld [vmem:[%s2376_s10 + $0x60] ss:$8 sps:$4 sm:$0xff]  }
 0x4c6   :  { %994 = vmatpush1.bf16.msra.mxu0 %v1687_v52  ;;  %v1722_v52 = vld [vmem:[%s2377_s11 + $0x28] sm:$0xff]  }
 0x4c7   :  { %v570_v58 = vmul.f32 %v569_v51, %v565_v55  ;;  %995 = vmatprep.subr.bf16.mxu0 %v1692_v54  ;;  %v1725_v54 = vld [vmem:[%s2377_s11 + $0x10] sm:$0xff]  }
 0x4c8   :  { %v1737_v5 = vpop.eup %1736 }
 0x4c9   :  { %v575_v60 = vadd.f32 %v574_v53, %v570_v58  ;;  %v810_v8 = vmul.f32 %v1737_v5, %v803_v39  ;;  %v1690_v58 = vld [vmem:[%s2376_s10 + $0x50] ss:$8 sps:$4 sm:$0xff]  }
 0x4ca   :  { %996 = vmatpush1.bf16.msra.mxu0 %v1690_v58  ;;  %v1714_v5 = vld [vmem:[%s2376_s10 + $0x90] ss:$8 sps:$4 sm:$0xff]   ;;  %v1727_v58 = vld [vmem:[%s2377_s11] sm:$0xff]  }
 0x4cb   :  { %v576_v61 = vmax.f32 %v575_v60, 0.0  ;;  %v815_v11 = vmul.f32 %v814_v7, %v810_v8  ;;  %v1693_v60 = vld [vmem:[%s2376_s10 + $0x40] ss:$8 sps:$4 sm:$0xff]   ;;  %v1719_v7 = vld [vmem:[%s2376_s10 + $0x84] ss:$8 sps:$4 sm:$0xff]  }
 0x4cc   :  { %v1717_v8 = vld [vmem:[%s2376_s10 + $0x80] ss:$8 sps:$4 sm:$0xff]  }
 0x4cd   :  { %v577_v63 = vpack.c.bf16 %v576_v61, %v576_v61  ;;  %v820_v13 = vadd.f32 %v819_v10, %v815_v11  ;;  %v1695_v61 = vld [vmem:[%s2376_s10 + $0x44] ss:$8 sps:$4 sm:$0xff]  }
 0x4ce   :  { %997 = vmatprep.subr.bf16.mxu0 %v1695_v61  ;;  %v1730_v61 = vld [vmem:[%s2377_s11 + $0x48] sm:$0xff]  }
 0x4cf   :  { %1586 = vmatmul.mubr.bf16.vlgmr.msra.gmra.mxu1 %v577_v63  ;;  %v821_v16 = vmax.f32 %v820_v13, 0.0  ;;  %998 = vmatpush1.bf16.msra.mxu0 %v1693_v60  ;;  %v1710_v63 = vld [vmem:[%s2376_s10 + $0xb4] ss:$8 sps:$4 sm:$0xff]  }
 0x4d0   :  { %1608 = vmatpush3.bf16.msra.mxu1 %v1676_v62  ;;  %1623 = vmatprep.mubr.msk.bf16.mxu1 %vm1904_vm1, %v1903_v1  ;;  %v1698_v62 = vld [vmem:[%s2376_s10 + $0x34] ss:$8 sps:$4 sm:$0xff]  }
 0x4d1   :  { %1609 = vmatprep.subr.bf16.mxu1 %v1903_v1  ;;  %v822_v18 = vpack.c.bf16 %v821_v16, %v821_v16  ;;  %1075 = vmatprep.subr.bf16.mxu0 %v1698_v62  ;;  %v686_v16 = vrot.slane %v2183_v19, %v2078_v56  ;;  %v1729_v60 = vld [vmem:[%s2377_s11 + $0x50] sm:$0xff]   ;;  %v1731_v62 = vld [vmem:[%s2377_s11 + $0x40] sm:$0xff]  }
 0x4d4   :  { %1610 = vmatpush3.bf16.msra.mxu1 %v1677_v2  ;;  %v1708_v2 = vld [vmem:[%s2376_s10 + $0xb0] ss:$8 sps:$4 sm:$0xff]  }
 0x4d5   :  { %1611 = vmatprep.subr.bf16.mxu1 %v1903_v1 }
 0x4d8   :  { %1612 = vmatpush3.bf16.msra.mxu1 %v1678_v3  ;;  %v1713_v3 = vld [vmem:[%s2376_s10 + $0xa4] ss:$8 sps:$4 sm:$0xff]  }
 0x4d9   :  { %1613 = vmatprep.subr.bf16.mxu1 %v1903_v1 }
 0x4dc   :  { %1614 = vmatpush3.bf16.msra.mxu1 %v1679_v4  ;;  %v1711_v4 = vld [vmem:[%s2376_s10 + $0xa0] ss:$8 sps:$4 sm:$0xff]  }
 0x4dd   :  { %1615 = vmatprep.subr.bf16.mxu1 %v1903_v1 }
 0x4e0   :  { %1616 = vmatpush3.bf16.msra.mxu1 %v1680_v6  ;;  %v1716_v6 = vld [vmem:[%s2376_s10 + $0x94] ss:$8 sps:$4 sm:$0xff]  }
 0x4e1   :  { %1617 = vmatprep.subr.bf16.mxu1 %v1903_v1 }
 0x4e4   :  { %1618 = vmatpush3.bf16.msra.mxu1 %v1681_v9 }
 0x4e5   :  { %1619 = vmatprep.subr.bf16.mxu1 %v1903_v1 }
 0x4e8   :  { %1620 = vmatpush3.bf16.msra.mxu1 %v1682_v12 }
 0x4e9   :  { %1621 = vmatprep.subr.bf16.mxu1 %v1903_v1  ;;  %v342_v1 = vrot.slane %v2188_v20, %v2038_v29 }
 0x4eb   :  { %v426_v24 = vadd.f32 %v2094_v17, %v342_v1 }
 0x4ec   :  { %1622 = vmatpush3.bf16.msra.mxu1 %v1683_v14 }
 0x4ed   :  { %v432_v28 = vsel %vm431_vm6, %v426_v24, 0.0  ;;  %1159 = vmatprep.subr.bf16.mxu1 %v1710_v63 }
 0x4ef   :  { %1624 = vmatmul.mubr.bf16.vlgmr.msra.gmra.mxu1 %v822_v18 }
 0x4f0   :  { %1183 = vmatprep.mubr.bf16.mxu1 %v1902_v0  ;;  %1160 = vmatpush1.bf16.msra.mxu1 %v1708_v2 }
 0x4f1   :  { %1161 = vmatprep.subr.bf16.mxu1 %v1713_v3 }
 0x4f4   :  { %1162 = vmatpush1.bf16.msra.mxu1 %v1711_v4 }
 0x4f5   :  { %1163 = vmatprep.subr.bf16.mxu1 %v1716_v6 }
 0x4f8   :  { %1164 = vmatpush1.bf16.msra.mxu1 %v1714_v5 }
 0x4f9   :  { %1165 = vmatprep.subr.bf16.mxu1 %v1719_v7 }
 0x4fc   :  { %1166 = vmatpush1.bf16.msra.mxu1 %v1717_v8 }
 0x58f   :  { %v664_v22 = vpop.f32.mrf.mxu1 }
 0x590   :  { %v665_v15 = vadd.f32 %v664_v22, %v581_v21  ;;  %v691_v21 = vrot.slane %v2183_v19, %v2080_v57  ;;  %v1699_v19 = vld [vmem:[%s2376_s10 + $0x20] ss:$8 sps:$4 sm:$0xff]  }
 0x591   :  { %v1587_v23 = vpop.f32.mrf.mxu1 }
 0x592   :  { %v670_v25 = vsel %vm431_vm6, %v665_v15, 0.0 }
 0x593   :  { %671 = vadd.xlane.f32.xlu1 %v670_v25  ;;  %v667_v26 = vpop.f32.mrf.mxu1  ;;  %v1696_v25 = vld [vmem:[%s2376_s10 + $0x30] ss:$8 sps:$4 sm:$0xff]  }
 0x594   :  { %v449_v26 = vrot.slane %v2188_v20, %v2078_v56 }
 0x595   :  { %v1588_v27 = vpop.f32.mrf.mxu1 }
 0x597   :  { %433 = vadd.xlane.f32.xlu1 %v432_v28 }
 0x5af   :  { %v909_v32 = vpop.f32.mrf.mxu1 }
 0x5b0   :  { %v910_v33 = vadd.f32 %v909_v32, %v826_v31  ;;  %v1701_v31 = vld [vmem:[%s2376_s10 + $0x24] ss:$8 sps:$4 sm:$0xff]   ;;  %v454_v32 = vrot.slane %v2188_v20, %v2080_v57 }
 0x5b1   :  { %v1625_v34 = vpop.f32.mrf.mxu1 }
 0x5b2   :  { %v915_v17 = vsel %vm431_vm6, %v910_v33, 0.0 }
 0x5b3   :  { %916 = vadd.xlane.f32.xlu1 %v915_v17  ;;  %v912_v35 = vpop.f32.mrf.mxu1 }
 0x5b5   :  { %v1626_v36 = vpop.f32.mrf.mxu1 }
 0x5b6   :  { %v1702_v36 = vld [vmem:[%s2376_s10 + $0x10] ss:$8 sps:$4 sm:$0xff]  }
 0x61c   :  { %v672_v37 = vpop.xlane.xlu1 %671 }
 0x61d   :  { %v673_v39 = vmul.f32 0.015625, %v672_v37 }
 0x61f   :  { %v674_v40 = vsub.f32 %v665_v15, %v673_v39  ;;  %v1707_v39 = vld [vmem:[%s2376_s10 + $0x4] ss:$8 sps:$4 sm:$0xff]  }
 0x620   :  { %v434_v38 = vpop.xlane.xlu1 %433 }
 0x621   :  { %v436_v41 = vmul.f32 0.015625, %v434_v38  ;;  %v675_v42 = vmul.f32 %v674_v40, %v674_v40 }
 0x623   :  { %v2205_v43 = vsub.f32 %v426_v24, %v436_v41  ;;  %v676_v44 = vsel %vm431_vm6, %v675_v42, 0.0  ;;  %v1720_v41 = vld [vmem:[%s2377_s11 + $0x38] sm:$0xff]  }
 0x624   :  { %677 = vadd.xlane.f32.xlu1 %v676_v44 }
 0x625   :  { %v438_v45 = vmul.f32 %v2205_v43, %v2205_v43 }
 0x627   :  { %v439_v46 = vsel %vm431_vm6, %v438_v45, 0.0  ;;  %v936_v45 = vrot.slane %v2200_v30, %v2080_v57 }
 0x628   :  { %440 = vadd.xlane.f32.xlu0 %v439_v46 }
 0x63c   :  { %v917_v49 = vpop.xlane.xlu1 %916 }
 0x63d   :  { %v918_v51 = vmul.f32 0.015625, %v917_v49 }
 0x63f   :  { %v2223_v53 = vsub.f32 %v910_v33, %v918_v51  ;;  %v1704_v33 = vld [vmem:[%s2376_s10 + $0x14] ss:$8 sps:$4 sm:$0xff]  }
 0x640   :  { %v1721_v51 = vld [vmem:[%s2377_s11 + $0x30] sm:$0xff]  }
 0x641   :  { %v920_v55 = vmul.f32 %v2223_v53, %v2223_v53 }
 0x643   :  { %v921_v59 = vsel %vm431_vm6, %v920_v55, 0.0  ;;  %v1726_v55 = vld [vmem:[%s2377_s11 + $0x8] sm:$0xff]  }
 0x644   :  { %922 = vadd.xlane.f32.xlu1 %v921_v59  ;;  %v1728_v59 = vld [vmem:[%s2377_s11 + $0x58] sm:$0xff]  }
 0x6ad   :  { %v678_v9 = vpop.xlane.xlu1 %677 }
 0x6ae   :  { %v679_v10 = vmul.f32 0.015625, %v678_v9  ;;  %v202_v9 = vld [vmem:[%s2378_s12] sm:$0xf] }
 0x6b0   :  { %v680_v11 = vadd.f32 1e-05, %v679_v10  ;;  %v1198_v10 = vrot.slane %v202_v9, %v2038_v29 }
 0x6b1   :  { %v441_v12 = vpop.xlane.xlu0 %440 }
 0x6b2   :  { %1738 = vrsqrt.f32 %v680_v11  ;;  %v442_v13 = vmul.f32 0.015625, %v441_v12  ;;  %v1208_v12 = vrot.slane %v1198_v10, %v2038_v29 }
 0x6b4   :  { %v443_v14 = vadd.f32 1e-05, %v442_v13 }
 0x6b6   :  { %1740 = vrsqrt.f32 %v443_v14 }
 0x6bf   :  { %v1739_v18 = vpop.eup %1738 }
 0x6c0   :  { %v682_v1 = vmul.f32 %v1739_v18, %v674_v40  ;;  %v1705_v40 = vld [vmem:[%s2376_s10] ss:$8 sps:$4 sm:$0xff]  }
 0x6c2   :  { %v687_v22 = vmul.f32 %v686_v16, %v682_v1 }
 0x6c3   :  { %v1741_v23 = vpop.eup %1740 }
 0x6c4   :  { %v692_v15 = vadd.f32 %v691_v21, %v687_v22  ;;  %v445_v27 = vmul.f32 %v1741_v23, %v2205_v43  ;;  %v931_v43 = vrot.slane %v2200_v30, %v2078_v56  ;;  %v1723_v30 = vld [vmem:[%s2377_s11 + $0x20] sm:$0xff]  }
 0x6c6   :  { %v693_v24 = vmax.f32 %v692_v15, 0.0  ;;  %v450_v34 = vmul.f32 %v449_v26, %v445_v27 }
 0x6c8   :  { %v694_v28 = vpack.c.bf16 %v693_v24, %v693_v24  ;;  %v455_v20 = vadd.f32 %v454_v32, %v450_v34 }
 0x6ca   :  { %1436 = vmatmul.mubr.msk.bf16.vlgmr.msra.gmra.mxu0 %vm431_vm6, %v694_v28  ;;  %v456_v38 = vmax.f32 %v455_v20, 0.0 }
 0x6cb   :  { %1076 = vmatpush1.bf16.msra.mxu0 %v1696_v25  ;;  %1099 = vmatprep.mubr.bf16.mxu0 %v1902_v0 }
 0x6cc   :  { %1077 = vmatprep.subr.bf16.mxu0 %v1701_v31  ;;  %v457_v42 = vpack.c.bf16 %v456_v38, %v456_v38 }
 0x6cd   :  { %v923_v17 = vpop.xlane.xlu1 %922 }
 0x6ce   :  { %v924_v35 = vmul.f32 0.015625, %v923_v17 }
 0x6cf   :  { %1078 = vmatpush1.bf16.msra.mxu0 %v1699_v19 }
 0x6d0   :  { %v925_v37 = vadd.f32 1e-05, %v924_v35  ;;  %1079 = vmatprep.subr.bf16.mxu0 %v1704_v33 }
 0x6d2   :  { %1742 = vrsqrt.f32 %v925_v37 }
 0x6d3   :  { %1080 = vmatpush1.bf16.msra.mxu0 %v1702_v36 }
 0x6d4   :  { %1081 = vmatprep.subr.bf16.mxu0 %v1707_v39 }
 0x6d7   :  { %1082 = vmatpush1.bf16.msra.mxu0 %v1705_v40 }
 0x6d8   :  { %1322 = vmatprep.subr.bf16.mxu0 %v1902_v0 }
 0x6da   :  { %1445 = vmatmul.mubr.msk.bf16.vlgmr.msra.gmra.mxu0 %vm431_vm6, %v457_v42 }
 0x6db   :  { %1323 = vmatpush1.bf16.msra.mxu0 %v1720_v41 }
 0x6dc   :  { %1324 = vmatprep.subr.bf16.mxu0 %v1902_v0 }
 0x6df   :  { %v1743_v44 = vpop.eup %1742  ;;  %1325 = vmatpush1.bf16.msra.mxu0 %v1721_v51 }
 0x6e0   :  { %v927_v46 = vmul.f32 %v1743_v44, %v2223_v53  ;;  %1326 = vmatprep.subr.bf16.mxu0 %v1902_v0  ;;  %v1724_v53 = vld [vmem:[%s2377_s11 + $0x18] sm:$0xff]   ;;  %s1906_s11 = smov [#allocation13]  }
 0x6e1   :  { %s1370_s12 = sshll.u32 %s1906_s11, 4  ;;  %s1371_s12 = int_to_ptr.vmem [resolvable:$true] %s1370_s12 }
 0x6e2   :  { %v932_v47 = vmul.f32 %v931_v43, %v927_v46  ;;  %s1864_s16 = scalar_lea.vmem %s1371_s12, 64  ;;  %p1869_p3 = scmp.lt.s32.totalorder %s1371_s12, %s1371_s12 }
 0x6e3   :  { %1327 = vmatpush1.bf16.msra.mxu0 %v1722_v52  ;;  %p1865_p2 = scmp.ne.s32.totalorder %s1371_s12, %s1864_s16  ;;  %p1870_p4 = scmp.lt.s32.totalorder %s1864_s16, %s1864_s16 }
 0x6e4   :  { %v937_v48 = vadd.f32 %v936_v45, %v932_v47  ;;  %1328 = vmatprep.subr.bf16.mxu0 %v1902_v0 }
 0x6e5   :  { %p1871_p5 = por %p1870_p4, %p1869_p3 }
 0x6e6   :  { %v938_v49 = vmax.f32 %v937_v48, 0.0 }
 0x6e7   :  { %1329 = vmatpush1.bf16.msra.mxu0 %v1723_v30  ;;  %p1872_p6 = pnand %p1871_p5, %p1865_p2 }
 0x6e8   :  { %v939_v50 = vpack.c.bf16 %v938_v49, %v938_v49  ;;  %1330 = vmatprep.subr.bf16.mxu0 %v1902_v0 }
 0x6ea   :  { %1454 = vmatmul.mubr.msk.bf16.vlgmr.msra.gmra.mxu1 %vm431_vm6, %v939_v50 }
 0x6eb   :  { %1331 = vmatpush1.bf16.msra.mxu0 %v1724_v53 }
 0x6ec   :  { %1332 = vmatprep.subr.bf16.mxu0 %v1902_v0 }
 0x6ef   :  { %1333 = vmatpush1.bf16.msra.mxu0 %v1725_v54 }
 0x6f0   :  { %1334 = vmatprep.subr.bf16.mxu0 %v1902_v0 }
 0x6f3   :  { %1335 = vmatpush1.bf16.msra.mxu0 %v1726_v55 }
 0x6f4   :  { %1336 = vmatprep.subr.bf16.mxu0 %v1902_v0 }
 0x6f7   :  { %1337 = vmatpush1.bf16.msra.mxu0 %v1727_v58 }
 0x6f8   :  { %1346 = vmatprep.subr.bf16.mxu0 %v1902_v0 }
 0x6fb   :  { %1347 = vmatpush2.bf16.msra.mxu0 %v1728_v59 }
 0x6fc   :  { %1348 = vmatprep.subr.bf16.mxu0 %v1902_v0 }
 0x6ff   :  { %1349 = vmatpush2.bf16.msra.mxu0 %v1729_v60 }
 0x700   :  { %1350 = vmatprep.subr.bf16.mxu0 %v1902_v0 }
 0x703   :  { %1351 = vmatpush2.bf16.msra.mxu0 %v1730_v61 }
 0x704   :  { %1352 = vmatprep.subr.bf16.mxu0 %v1902_v0  ;;  %v1202_v0 = vrot.slane %v202_v9, %v2080_v57  ;;  %v1246_v57 = vrot.slane %v202_v9, %v2078_v56 }
 0x706   :  { %v1212_v18 = vrot.slane %v1202_v0, %v2038_v29 }
 0x707   :  { %1353 = vmatpush2.bf16.msra.mxu0 %v1731_v62 }
 0x78a   :  { %v1017_v63 = vpop.f32.mrf.mxu0 }
 0x78c   :  { %v1019_v2 = vpop.f32.mrf.mxu0 }
 0x78e   :  { %v1021_v3 = vpop.f32.mrf.mxu0 }
 0x790   :  { %v1022_v4 = vpop.f32.mrf.mxu0 }
 0x79a   :  { %v1101_v5 = vpop.f32.mrf.mxu0 }
 0x79b   :  { %v1102_v11 = vadd.f32 %v1101_v5, %v1017_v63 }
 0x79c   :  { %v1103_v6 = vpop.f32.mrf.mxu0 }
 0x79d   :  { %v1104_v14 = vadd.f32 %v1103_v6, %v1019_v2 }
 0x79e   :  { %v1105_v7 = vpop.f32.mrf.mxu0 }
 0x7a0   :  { %v1106_v8 = vpop.f32.mrf.mxu0 }
 0x7aa   :  { %v1185_v13 = vpop.f32.mrf.mxu1 }
 0x7ab   :  { %v1192_v16 = vadd.f32 %v1185_v13, %v1102_v11 }
 0x7ac   :  { %v1187_v21 = vpop.f32.mrf.mxu1 }
 0x7ad   :  { %v1213_v1 = vadd.f32 %v1208_v12, %v1192_v16  ;;  %v1193_v22 = vadd.f32 %v1187_v21, %v1104_v14 }
 0x7ae   :  { %v1189_v15 = vpop.f32.mrf.mxu1 }
 0x7af   :  { %v1214_v23 = vadd.f32 %v1212_v18, %v1193_v22  ;;  %v1215_v24 = vmax.f32 %v1213_v1, 0.0 }
 0x7b0   :  { %v1190_v25 = vpop.f32.mrf.mxu1 }
 0x7b1   :  { %v1216_v26 = vmax.f32 %v1214_v23, 0.0  ;;  %v1217_v28 = vpack.c.bf16 %v1215_v24, %v1215_v24 }
 0x7b3   :  { %v1218_v27 = vpack.c.bf16 %v1216_v26, %v1216_v26 }
 0x7b5   :  { %1467 = vmatprep.mubr.msk.bf16.mxu0 %vm431_vm6, %v1218_v27 }
 0x7b6   :  { %1355 = vmatmul.mubr.bf16.vlgmr.msra.gmra.mxu0 %v1217_v28 }
 0x876   :  { %v1356_v31 = vpop.f32.mrf.mxu0 }
 0x877   :  { %v1357_v19 = vadd.f32 %v1356_v31, %v1246_v57 }
 0x878   :  { %v1358_v29 = vpop.f32.mrf.mxu0 }
 0x879   :  { %v1362_v32 = vpack.c.bf16 %v1357_v19, %v1357_v19 }
 0x87a   :  { %v1359_v33 = vpop.f32.mrf.mxu0 }
 0x87b   :  { %1363 = vst [vmem:[#allocation13] sm:$0xf] %v1362_v32 }
 0x87c   :  { %v1360_v34 = vpop.f32.mrf.mxu0 }
 0x87d   :  { %1875 = shalt.err (!%p1872_p6)
}
 0x87e   :  { %1373 = dma.vmem_to_hbm [thread:$0]  %s1371_s12, 64, %s2379_s13, [#allocation4]  }
 0x87f   :  { %1892 = dma.done.wait [#allocation4], 64  }
 0x880   :  { %1893 = vsyncadd [#allocation4], 4294967232 }
 0x881   :  { %1377 = vsyncpa [#allocation3], 1 }
 0x882   :  { %1378 = vsyncpa [#allocation6], 1 }
 0x883   :  { %1379 = vsyncpa [#allocation9], 1 }
 0x884   :  { %1380 = vsyncpa [#allocation12], 1 }
 0x885   :  { %1381 = vsyncpa [#allocation4], 1 }

</bundles_post_ra>
